<compile_context>
chip_gen: v6e
topology: v6e:2x2x1
jax: 0.10.0
libtpu: 0.0.40
codegen_flags: <defaults>
</compile_context>

<pallas_src>
import functools

import numpy as np
import jax
import jax.numpy as jnp
from jax import lax
from jax.experimental import pallas as pl
from jax.experimental.pallas import tpu as pltpu

# ---------------- hyperparameters / special indices ----------------
EMBED_SIZE = 16
TAG_EMBED_SIZE = 8
HIDDEN_SIZE = 32          # unidirectional -> per-direction hidden = 32
NUM_LAYERS = 1
NUM_DIRS = 1
PAD_IDX = 0
SOS_IDX = 1
EOS_IDX = 2
NEG = -10000.0
DIN_RAW = EMBED_SIZE + TAG_EMBED_SIZE + 1     # 25
DIN_PAD = 32                                  # 8-aligned contraction dim


# ---------------- fused kernel: LSTM + Linear + CRF forward + gold ----------
def _generator_kernel(emb_ref, mask_ref, oh_ref, gtr_ref, wih_ref, bias_ref,
                      wcat_ref, bout_ref, etr_ref, out_ref, *, T, BP, H, K):
    HH = 4 * H

    # ---- hoisted input projection: one GEMM for all T*BP rows -> [T*BP, 4H]
    gates_x = (jnp.dot(emb_ref[...], wih_ref[...],
                       preferred_element_type=jnp.float32) + bias_ref[...])
    mask_all = mask_ref[...]                         # [T*BP, 1]
    oh_all = oh_ref[...]                             # [T*BP, K]
    w_cat = wcat_ref[...]                            # [H, 4H + KPAD]
    bout = bout_ref[...]                             # [1, K]
    exp_trans_t = etr_ref[...]                       # [K, K]  = exp(trans).T (src,dst)

    col = lax.broadcasted_iota(jnp.int32, (BP, K), 1)
    score0 = jnp.where(col == SOS_IDX, jnp.float32(0.0), jnp.float32(NEG))

    def step(carry, g_x, mk, oh_t):
        c, hy, score, gold = carry
        # LSTM cell: gate preactivation from step t-1's h @ w_cat matmul.
        g = g_x + hy[:, :HH]                                   # [BP, 4H] one vreg
        sig = jax.nn.sigmoid(g)                                # full-vreg EUP push
        th = jnp.tanh(g)                                       # full-vreg EUP push
        i_g = sig[:, 0:H]
        f_g = sig[:, H:2 * H]
        o_g = sig[:, 3 * H:4 * H]
        g_g = th[:, 2 * H:3 * H]
        c = f_g * c + i_g * g_g
        h = o_g * jnp.tanh(c)
        # ONE MXU pass -> next-step gate preactivations AND this step's y_t.
        hy = jnp.dot(h, w_cat, preferred_element_type=jnp.float32)
        emit = (hy[:, HH:HH + K] + bout) * mk                  # masked y_t  [BP, K]

        # CRF forward step (exp-space; transition sum on the MXU).
        # new_score[b,i] = logsumexp_j(score[b,j] + trans[i,j]) + emit[b,i]
        ms = jnp.max(score, axis=-1, keepdims=True)            # [BP, 1]
        es = jnp.exp(score - ms)                               # [BP, K]
        tsum = jnp.dot(es, exp_trans_t,
                       preferred_element_type=jnp.float32)     # [BP, K]
        # tiny floor keeps fully-blocked targets (exp(-1e4) -> 0) finite;
        # their downstream contribution is ~1e-30, i.e. below f32 resolution.
        new_score = ms + jnp.log(tsum + jnp.float32(1e-30)) + emit
        score = new_score * mk + score * (1.0 - mk)

        # gold emission score via precomputed one-hot of the gold next tag.
        gold = gold + jnp.sum(emit * oh_t, axis=-1, keepdims=True)
        return (c, hy, score, gold)

    carry = (jnp.zeros((BP, H), jnp.float32),                 # c
             jnp.zeros((BP, w_cat.shape[1]), jnp.float32),    # hy (h0 = 0)
             score0,                                          # CRF score
             jnp.zeros((BP, 1), jnp.float32))                 # gold emission acc

    if T <= 16:                               # static unroll for short seqs
        for t in range(T):
            sl = slice(t * BP, (t + 1) * BP)
            carry = step(carry, gates_x[sl, :], mask_all[sl, :], oh_all[sl, :])
    else:                                     # bounded live ranges for long T
        def body(t, carry):
            g_x = lax.dynamic_slice_in_dim(gates_x, t * BP, BP, axis=0)
            mk = lax.dynamic_slice_in_dim(mask_all, t * BP, BP, axis=0)
            oh_t = lax.dynamic_slice_in_dim(oh_all, t * BP, BP, axis=0)
            return step(carry, g_x, mk, oh_t)
        carry = lax.fori_loop(0, T, body, carry, unroll=4)

    _, _, score, gold = carry
    m = jnp.max(score, axis=-1, keepdims=True)
    z = m + jnp.log(jnp.sum(jnp.exp(score - m), axis=-1, keepdims=True))
    res = z - gold - gtr_ref[...]                             # [BP, 1]
    out_ref[...] = jnp.broadcast_to(res, (BP, 128))           # lane-dense store


def run_generator_kernel(emb, mask, oh, gtr, wih, bias, w_cat, bout,
                         exp_trans_t, *, T, BP):
    TB, Din = emb.shape
    H = w_cat.shape[0]
    K = bout.shape[1]
    WC = w_cat.shape[1]
    assert TB == T * BP

    kernel = functools.partial(_generator_kernel, T=T, BP=BP, H=H, K=K)

    def full(shape):                               # whole array = one block
        return pl.BlockSpec(shape, lambda i: (0, 0))

    return pl.pallas_call(
        kernel,
        out_shape=jax.ShapeDtypeStruct((BP, 128), jnp.float32),
        grid_spec=pltpu.PrefetchScalarGridSpec(
            num_scalar_prefetch=0,
            grid=(1,),                             # single invocation
            in_specs=[
                full((TB, Din)),       # emb slab (time-major, padded batch)
                full((TB, 1)),         # mask
                full((TB, K)),         # one-hot of gold next tag
                full((BP, 1)),         # gold transition score (pre-summed)
                full((Din, 4 * H)),    # W_ih^T (rows padded to 32 with zeros)
                full((1, 4 * H)),      # b_ih + b_hh (pre-folded)
                full((H, WC)),         # [W_hh | W_out(pad)] single per-step RHS
                full((1, K)),          # b_out
                full((K, K)),          # exp(trans)^T   (src, dst)
            ],
            out_specs=full((BP, 128)),
        ),
        compiler_params=pltpu.CompilerParams(
            dimension_semantics=("arbitrary",)),
    )(emb, mask, oh, gtr, wih, bias, w_cat, bout, exp_trans_t)


# ---------------- parameters (deterministic synthetic init) -----------------
def init_params(key, vocab_size, num_tags):
    keys = jax.random.split(key, 9)
    E, Et, H, K = EMBED_SIZE, TAG_EMBED_SIZE, HIDDEN_SIZE, num_tags
    s = 1.0 / jnp.sqrt(jnp.float32(H))

    embed = jax.random.normal(keys[0], (vocab_size, E), jnp.float32)
    embed = embed.at[PAD_IDX].set(0.0)                        # padding_idx
    embed_tag = jax.random.normal(keys[1], (K, Et), jnp.float32)
    embed_tag = embed_tag.at[PAD_IDX].set(0.0)                # padding_idx

    wih = jax.random.uniform(keys[2], (4 * H, DIN_RAW), jnp.float32, -s, s)
    whh = jax.random.uniform(keys[3], (4 * H, H), jnp.float32, -s, s)
    bih = jax.random.uniform(keys[4], (4 * H,), jnp.float32, -s, s)
    bhh = jax.random.uniform(keys[5], (4 * H,), jnp.float32, -s, s)
    wout = jax.random.uniform(keys[6], (K, H), jnp.float32, -s, s)
    bout = jax.random.uniform(keys[7], (K,), jnp.float32, -s, s)

    trans = jax.random.normal(keys[8], (K, K), jnp.float32)
    trans = trans.at[SOS_IDX, :].set(NEG)
    trans = trans.at[:, EOS_IDX].set(NEG)
    trans = trans.at[:, PAD_IDX].set(NEG)
    trans = trans.at[PAD_IDX, :].set(NEG)
    trans = trans.at[PAD_IDX, EOS_IDX].set(0.0)
    trans = trans.at[PAD_IDX, PAD_IDX].set(0.0)

    # ---- kernel-ready layouts ----
    kpad = max(128, ((K + 127) // 128) * 128)
    wih_t = jnp.zeros((DIN_PAD, 4 * H), jnp.float32).at[:DIN_RAW].set(wih.T)
    wout_pad = jnp.zeros((H, kpad), jnp.float32).at[:, :K].set(wout.T)
    w_cat = jnp.concatenate([whh.T, wout_pad], axis=1)        # [H, 4H + kpad]

    return dict(
        embed=embed, embed_tag=embed_tag,
        wih=wih_t,                          # [32, 4H] zero-padded rows
        bias=(bih + bhh)[None, :],          # [1, 4H]  pre-folded biases
        w_cat=w_cat,                        # [H, 4H + 128]
        bout=bout[None, :],                 # [1, K]
        trans=trans,                        # [K, K]  (dst, src)
        exp_trans_t=jnp.exp(trans).T,       # [K, K]  (src, dst)
    )


# ---------------- full Generator forward ------------------------------------
def generator_forward(params, x, f, tags, y0):
    B, T = x.shape
    K = params["trans"].shape[0]
    BP = max(8, ((B + 7) // 8) * 8)          # pad batch to sublanes; 1 kernel
    pad = BP - B

    # glue: embedding lookups built TIME-MAJOR directly (no slab transpose)
    x_tm, tags_tm = x.T, tags.T                                   # [T, B]
    mask_tm = (x_tm > 0).astype(jnp.float32)                      # [T, B]
    emb = jnp.concatenate(
        [params["embed"][x_tm],                                   # [T, B, E]
         params["embed_tag"][tags_tm],                            # [T, B, Et]
         f[:, 0].T[..., None].astype(jnp.float32)], axis=-1)      # [T, B, 25]
    emb = jnp.pad(emb, ((0, 0), (0, pad), (0, DIN_PAD - emb.shape[-1])))

    # glue: gold-path transition score + one-hot of gold next tag (tiny gathers)
    y0_ext = jnp.concatenate(
        [jnp.full((B, 1), SOS_IDX, dtype=y0.dtype), y0], axis=1)  # [B, T+1]
    gold_trans = jnp.sum(
        params["trans"][y0_ext[:, 1:], y0_ext[:, :-1]] * mask_tm.T, axis=1)
    onehot_next = jax.nn.one_hot(y0_ext[:, 1:].T, K, dtype=jnp.float32)  # [T,B,K]

    mask_p = jnp.pad(mask_tm, ((0, 0), (0, pad)))
    oh_p = jnp.pad(onehot_next, ((0, 0), (0, pad), (0, 0)))
    gtr_p = jnp.pad(gold_trans, (0, pad))[:, None]                # [BP, 1]

    out = run_generator_kernel(
        emb.reshape(T * BP, DIN_PAD),
        mask_p.reshape(T * BP, 1),
        oh_p.reshape(T * BP, K),
        gtr_p,
        params["wih"], params["bias"], params["w_cat"], params["bout"],
        params["exp_trans_t"],
        T=T, BP=BP)                                               # [BP, 128]
    # TODO(synk): on v7x with BP >= 16, add a batch-tile grid axis marked
    # "parallel" (3-D [T, BP, feat] slabs) so both TensorCores share the batch;
    # for long T, chunk the hoisted input GEMM and set vmem_limit_bytes.
    return out[:B, 0]


# ---------------- pure-JAX reference (log-space, mirrors the PyTorch loops) --
def _log_sum_exp(x):
    m = jnp.max(x, axis=-1)
    return m + jnp.log(jnp.sum(jnp.exp(x - m[..., None]), axis=-1))


def reference_forward(params, x, f, tags, y0):
    B, T = x.shape
    H = HIDDEN_SIZE
    K = params["trans"].shape[0]
    hp = jax.lax.Precision.HIGHEST
    mask = (x > 0).astype(jnp.float32)                            # [B, T]
    emb = jnp.concatenate(
        [params["embed"][x], params["embed_tag"][tags],
         f[:, 0][..., None].astype(jnp.float32)], axis=-1)        # [B, T, 25]
    wih = params["wih"][:emb.shape[-1]]
    whh = params["w_cat"][:, :4 * H]
    wout = params["w_cat"][:, 4 * H:4 * H + K]
    h = jnp.zeros((B, H), jnp.float32)
    c = jnp.zeros((B, H), jnp.float32)
    ys = []
    for t in range(T):
        g = (jnp.dot(emb[:, t], wih, precision=hp) + params["bias"][0]
             + jnp.dot(h, whh, precision=hp))
        i_g = jax.nn.sigmoid(g[:, :H]); f_g = jax.nn.sigmoid(g[:, H:2 * H])
        g_g = jnp.tanh(g[:, 2 * H:3 * H]); o_g = jax.nn.sigmoid(g[:, 3 * H:])
        c = f_g * c + i_g * g_g
        h = o_g * jnp.tanh(c)
        ys.append((jnp.dot(h, wout, precision=hp) + params["bout"][0])
                  * mask[:, t][:, None])
    y = jnp.stack(ys, axis=1)                                     # [B, T, K]

    trans = params["trans"]
    score = jnp.full((B, K), NEG, jnp.float32).at[:, SOS_IDX].set(0.0)
    for t in range(T):
        mt = mask[:, t][:, None]
        combined = score[:, None, :] + y[:, t][:, :, None] + trans[None, :, :]
        score = _log_sum_exp(combined) * mt + score * (1.0 - mt)
    Z = _log_sum_exp(score)

    y0_ext = jnp.concatenate(
        [jnp.full((B, 1), SOS_IDX, dtype=y0.dtype), y0], axis=1)
    emit_gold = jnp.take_along_axis(y, y0_ext[:, 1:, None], axis=2)[..., 0]
    gold = (jnp.sum(emit_gold, axis=1)
            + jnp.sum(trans[y0_ext[:, 1:], y0_ext[:, :-1]] * mask, axis=1))
    return Z - gold


# ---------------- main -------------------------------------------------------
if __name__ == "__main__":
    key = jax.random.PRNGKey(0)
    B, T = 2, 8
    vocab_size, num_tags = 50, 8

    kx, kf, kt, ky, kp = jax.random.split(key, 5)
    x = jax.random.randint(kx, (B, T), 1, vocab_size)       # token ids, >0
    x = x.at[1, 6:].set(PAD_IDX)                            # seq lengths [8, 6]
    f = jax.random.normal(kf, (B, 2, T), jnp.float32)       # features [B, F, T]
    tags = jax.random.randint(kt, (B, T), 3, num_tags)      # tag ids
    y0 = jax.random.randint(ky, (B, T), 3, num_tags)        # gold tag ids

    params = init_params(kp, vocab_size, num_tags)

    fwd = jax.jit(generator_forward)
    out = jax.block_until_ready(fwd(params, x, f, tags, y0))
    assert out.shape == (B,) and out.dtype == jnp.float32
    assert bool(jnp.all(jnp.isfinite(out)))

    ref = jax.block_until_ready(jax.jit(reference_forward)(params, x, f, tags, y0))
    np.testing.assert_allclose(np.asarray(out), np.asarray(ref),
                               rtol=1e-2, atol=5e-2)
    print("KERNEL_OK")
</pallas_src>

<mosaic_0001>
module attributes {stable_mosaic.version = 11 : i64} {
  func.func @_generator_kernel(%arg0: i32, %arg1: memref<64x32xf32, #tpu.memory_space<vmem>>, %arg2: memref<64x1xf32, #tpu.memory_space<vmem>>, %arg3: memref<64x8xf32, #tpu.memory_space<vmem>>, %arg4: memref<8x1xf32, #tpu.memory_space<vmem>>, %arg5: memref<32x128xf32, #tpu.memory_space<vmem>>, %arg6: memref<1x128xf32, #tpu.memory_space<vmem>>, %arg7: memref<32x256xf32, #tpu.memory_space<vmem>>, %arg8: memref<1x8xf32, #tpu.memory_space<vmem>>, %arg9: memref<8x8xf32, #tpu.memory_space<vmem>>, %arg10: memref<8x128xf32, #tpu.memory_space<vmem>>) attributes {dimension_semantics = [#tpu.dimension_semantics<arbitrary>], iteration_bounds = array<i64: 1>, scalar_prefetch = 0 : i64, scratch_operands = 0 : i64, tpu.core_type = #tpu.core_type<tc>, window_params = [{pipeline_mode = #tpu.pipeline_mode<synchronous>, transform_indices = @transform_0, window_bounds = array<i64: 64, 32>}, {pipeline_mode = #tpu.pipeline_mode<synchronous>, transform_indices = @transform_1, window_bounds = array<i64: 64, 1>}, {pipeline_mode = #tpu.pipeline_mode<synchronous>, transform_indices = @transform_2, window_bounds = array<i64: 64, 8>}, {pipeline_mode = #tpu.pipeline_mode<synchronous>, transform_indices = @transform_3, window_bounds = array<i64: 8, 1>}, {pipeline_mode = #tpu.pipeline_mode<synchronous>, transform_indices = @transform_4, window_bounds = array<i64: 32, 128>}, {pipeline_mode = #tpu.pipeline_mode<synchronous>, transform_indices = @transform_5, window_bounds = array<i64: 1, 128>}, {pipeline_mode = #tpu.pipeline_mode<synchronous>, transform_indices = @transform_6, window_bounds = array<i64: 32, 256>}, {pipeline_mode = #tpu.pipeline_mode<synchronous>, transform_indices = @transform_7, window_bounds = array<i64: 1, 8>}, {pipeline_mode = #tpu.pipeline_mode<synchronous>, transform_indices = @transform_8, window_bounds = array<i64: 8, 8>}, {pipeline_mode = #tpu.pipeline_mode<synchronous>, transform_indices = @transform_9, window_bounds = array<i64: 8, 128>}]} {
    %c0 = arith.constant 0 : index
    %c0_0 = arith.constant 0 : index
    %0 = vector.load %arg1[%c0, %c0_0] : memref<64x32xf32, #tpu.memory_space<vmem>>, vector<64x32xf32>
    %c0_1 = arith.constant 0 : index
    %c0_2 = arith.constant 0 : index
    %1 = vector.load %arg5[%c0_1, %c0_2] : memref<32x128xf32, #tpu.memory_space<vmem>>, vector<32x128xf32>
    %cst = arith.constant dense<0.000000e+00> : vector<64x128xf32>
    %2 = tpu.matmul %0, %1, %cst {dimension_numbers = #tpu.dot_dimension_numbers<[1], [0], [0], [1], [0, 0, 1, 1], [], []>} : vector<64x32xf32>, vector<32x128xf32>, vector<64x128xf32> -> vector<64x128xf32>
    %c0_3 = arith.constant 0 : index
    %c0_4 = arith.constant 0 : index
    %3 = vector.load %arg6[%c0_3, %c0_4] : memref<1x128xf32, #tpu.memory_space<vmem>>, vector<1x128xf32>
    %4 = vector.broadcast %3 : vector<1x128xf32> to vector<64x128xf32>
    %5 = arith.addf %2, %4 : vector<64x128xf32>
    %c0_5 = arith.constant 0 : index
    %c0_6 = arith.constant 0 : index
    %6 = vector.load %arg2[%c0_5, %c0_6] : memref<64x1xf32, #tpu.memory_space<vmem>>, vector<64x1xf32>
    %c0_7 = arith.constant 0 : index
    %c0_8 = arith.constant 0 : index
    %7 = vector.load %arg3[%c0_7, %c0_8] : memref<64x8xf32, #tpu.memory_space<vmem>>, vector<64x8xf32>
    %c0_9 = arith.constant 0 : index
    %c0_10 = arith.constant 0 : index
    %8 = vector.load %arg7[%c0_9, %c0_10] : memref<32x256xf32, #tpu.memory_space<vmem>>, vector<32x256xf32>
    %c0_11 = arith.constant 0 : index
    %c0_12 = arith.constant 0 : index
    %9 = vector.load %arg8[%c0_11, %c0_12] : memref<1x8xf32, #tpu.memory_space<vmem>>, vector<1x8xf32>
    %c0_13 = arith.constant 0 : index
    %c0_14 = arith.constant 0 : index
    %10 = vector.load %arg9[%c0_13, %c0_14] : memref<8x8xf32, #tpu.memory_space<vmem>>, vector<8x8xf32>
    %11 = tpu.iota {dimensions = array<i32: 1>} : vector<8x8xi32>
    %c1_i32 = arith.constant 1 : i32
    %12 = vector.broadcast %c1_i32 : i32 to vector<8x8xi32>
    %13 = arith.cmpi eq, %11, %12 : vector<8x8xi32>
    %cst_15 = arith.constant 0.000000e+00 : f32
    %cst_16 = arith.constant -1.000000e+04 : f32
    %14 = vector.broadcast %cst_15 : f32 to vector<8x8xf32>
    %15 = vector.broadcast %cst_16 : f32 to vector<8x8xf32>
    %16 = arith.select %13, %14, %15 : vector<8x8xi1>, vector<8x8xf32>
    %cst_17 = arith.constant 0.000000e+00 : f32
    %17 = vector.broadcast %cst_17 : f32 to vector<8x32xf32>
    %cst_18 = arith.constant 0.000000e+00 : f32
    %18 = vector.broadcast %cst_18 : f32 to vector<8x256xf32>
    %cst_19 = arith.constant 0.000000e+00 : f32
    %19 = vector.broadcast %cst_19 : f32 to vector<8x1xf32>
    %20 = vector.extract_strided_slice %5 {offsets = [0, 0], sizes = [8, 128], strides = [1, 1]} : vector<64x128xf32> to vector<8x128xf32>
    %21 = vector.extract_strided_slice %6 {offsets = [0, 0], sizes = [8, 1], strides = [1, 1]} : vector<64x1xf32> to vector<8x1xf32>
    %22 = vector.extract_strided_slice %7 {offsets = [0, 0], sizes = [8, 8], strides = [1, 1]} : vector<64x8xf32> to vector<8x8xf32>
    %23 = vector.extract_strided_slice %18 {offsets = [0, 0], sizes = [8, 128], strides = [1, 1]} : vector<8x256xf32> to vector<8x128xf32>
    %24 = arith.addf %20, %23 : vector<8x128xf32>
    %25 = arith.negf %24 : vector<8x128xf32>
    %26 = math.exp %25 : vector<8x128xf32>
    %cst_20 = arith.constant 1.000000e+00 : f32
    %27 = vector.broadcast %cst_20 : f32 to vector<8x128xf32>
    %28 = arith.addf %27, %26 : vector<8x128xf32>
    %29 = arith.divf %27, %28 : vector<8x128xf32>
    %30 = math.tanh %24 : vector<8x128xf32>
    %31 = vector.extract_strided_slice %29 {offsets = [0, 0], sizes = [8, 32], strides = [1, 1]} : vector<8x128xf32> to vector<8x32xf32>
    %32 = vector.extract_strided_slice %29 {offsets = [0, 32], sizes = [8, 32], strides = [1, 1]} : vector<8x128xf32> to vector<8x32xf32>
    %33 = vector.extract_strided_slice %29 {offsets = [0, 96], sizes = [8, 32], strides = [1, 1]} : vector<8x128xf32> to vector<8x32xf32>
    %34 = vector.extract_strided_slice %30 {offsets = [0, 64], sizes = [8, 32], strides = [1, 1]} : vector<8x128xf32> to vector<8x32xf32>
    %35 = arith.mulf %32, %17 : vector<8x32xf32>
    %36 = arith.mulf %31, %34 : vector<8x32xf32>
    %37 = arith.addf %35, %36 : vector<8x32xf32>
    %38 = math.tanh %37 : vector<8x32xf32>
    %39 = arith.mulf %33, %38 : vector<8x32xf32>
    %cst_21 = arith.constant dense<0.000000e+00> : vector<8x256xf32>
    %40 = tpu.matmul %39, %8, %cst_21 {dimension_numbers = #tpu.dot_dimension_numbers<[1], [0], [0], [1], [0, 0, 1, 1], [], []>} : vector<8x32xf32>, vector<32x256xf32>, vector<8x256xf32> -> vector<8x256xf32>
    %41 = vector.extract_strided_slice %40 {offsets = [0, 128], sizes = [8, 8], strides = [1, 1]} : vector<8x256xf32> to vector<8x8xf32>
    %42 = vector.broadcast %9 : vector<1x8xf32> to vector<8x8xf32>
    %43 = arith.addf %41, %42 : vector<8x8xf32>
    %44 = vector.broadcast %21 : vector<8x1xf32> to vector<8x8xf32>
    %45 = arith.mulf %43, %44 : vector<8x8xf32>
    %cst_22 = arith.constant dense<0xFF800000> : vector<8xf32>
    %46 = vector.multi_reduction <maximumf>, %16, %cst_22 [1] : vector<8x8xf32> to vector<8xf32>
    %47 = vector.shape_cast %46 : vector<8xf32> to vector<8x1xf32>
    %48 = vector.broadcast %47 : vector<8x1xf32> to vector<8x8xf32>
    %49 = arith.subf %16, %48 : vector<8x8xf32>
    %50 = math.exp %49 : vector<8x8xf32>
    %cst_23 = arith.constant dense<0.000000e+00> : vector<8x8xf32>
    %51 = tpu.matmul %50, %10, %cst_23 {dimension_numbers = #tpu.dot_dimension_numbers<[1], [0], [0], [1], [0, 0, 1, 1], [], []>} : vector<8x8xf32>, vector<8x8xf32>, vector<8x8xf32> -> vector<8x8xf32>
    %cst_24 = arith.constant 1.000000e-30 : f32
    %52 = vector.broadcast %cst_24 : f32 to vector<8x8xf32>
    %53 = arith.addf %51, %52 : vector<8x8xf32>
    %54 = math.log %53 : vector<8x8xf32>
    %55 = vector.broadcast %47 : vector<8x1xf32> to vector<8x8xf32>
    %56 = arith.addf %55, %54 : vector<8x8xf32>
    %57 = arith.addf %56, %45 : vector<8x8xf32>
    %58 = vector.broadcast %21 : vector<8x1xf32> to vector<8x8xf32>
    %59 = arith.mulf %57, %58 : vector<8x8xf32>
    %cst_25 = arith.constant 1.000000e+00 : f32
    %60 = vector.broadcast %cst_25 : f32 to vector<8x1xf32>
    %61 = arith.subf %60, %21 : vector<8x1xf32>
    %62 = vector.broadcast %61 : vector<8x1xf32> to vector<8x8xf32>
    %63 = arith.mulf %16, %62 : vector<8x8xf32>
    %64 = arith.addf %59, %63 : vector<8x8xf32>
    %65 = arith.mulf %45, %22 : vector<8x8xf32>
    %cst_26 = arith.constant dense<0.000000e+00> : vector<8xf32>
    %66 = vector.multi_reduction <add>, %65, %cst_26 [1] : vector<8x8xf32> to vector<8xf32>
    %67 = vector.shape_cast %66 : vector<8xf32> to vector<8x1xf32>
    %68 = arith.addf %19, %67 : vector<8x1xf32>
    %69 = vector.extract_strided_slice %5 {offsets = [8, 0], sizes = [8, 128], strides = [1, 1]} : vector<64x128xf32> to vector<8x128xf32>
    %70 = vector.extract_strided_slice %6 {offsets = [8, 0], sizes = [8, 1], strides = [1, 1]} : vector<64x1xf32> to vector<8x1xf32>
    %71 = vector.extract_strided_slice %7 {offsets = [8, 0], sizes = [8, 8], strides = [1, 1]} : vector<64x8xf32> to vector<8x8xf32>
    %72 = vector.extract_strided_slice %40 {offsets = [0, 0], sizes = [8, 128], strides = [1, 1]} : vector<8x256xf32> to vector<8x128xf32>
    %73 = arith.addf %69, %72 : vector<8x128xf32>
    %74 = arith.negf %73 : vector<8x128xf32>
    %75 = math.exp %74 : vector<8x128xf32>
    %cst_27 = arith.constant 1.000000e+00 : f32
    %76 = vector.broadcast %cst_27 : f32 to vector<8x128xf32>
    %77 = arith.addf %76, %75 : vector<8x128xf32>
    %78 = arith.divf %76, %77 : vector<8x128xf32>
    %79 = math.tanh %73 : vector<8x128xf32>
    %80 = vector.extract_strided_slice %78 {offsets = [0, 0], sizes = [8, 32], strides = [1, 1]} : vector<8x128xf32> to vector<8x32xf32>
    %81 = vector.extract_strided_slice %78 {offsets = [0, 32], sizes = [8, 32], strides = [1, 1]} : vector<8x128xf32> to vector<8x32xf32>
    %82 = vector.extract_strided_slice %78 {offsets = [0, 96], sizes = [8, 32], strides = [1, 1]} : vector<8x128xf32> to vector<8x32xf32>
    %83 = vector.extract_strided_slice %79 {offsets = [0, 64], sizes = [8, 32], strides = [1, 1]} : vector<8x128xf32> to vector<8x32xf32>
    %84 = arith.mulf %81, %37 : vector<8x32xf32>
    %85 = arith.mulf %80, %83 : vector<8x32xf32>
    %86 = arith.addf %84, %85 : vector<8x32xf32>
    %87 = math.tanh %86 : vector<8x32xf32>
    %88 = arith.mulf %82, %87 : vector<8x32xf32>
    %cst_28 = arith.constant dense<0.000000e+00> : vector<8x256xf32>
    %89 = tpu.matmul %88, %8, %cst_28 {dimension_numbers = #tpu.dot_dimension_numbers<[1], [0], [0], [1], [0, 0, 1, 1], [], []>} : vector<8x32xf32>, vector<32x256xf32>, vector<8x256xf32> -> vector<8x256xf32>
    %90 = vector.extract_strided_slice %89 {offsets = [0, 128], sizes = [8, 8], strides = [1, 1]} : vector<8x256xf32> to vector<8x8xf32>
    %91 = vector.broadcast %9 : vector<1x8xf32> to vector<8x8xf32>
    %92 = arith.addf %90, %91 : vector<8x8xf32>
    %93 = vector.broadcast %70 : vector<8x1xf32> to vector<8x8xf32>
    %94 = arith.mulf %92, %93 : vector<8x8xf32>
    %cst_29 = arith.constant dense<0xFF800000> : vector<8xf32>
    %95 = vector.multi_reduction <maximumf>, %64, %cst_29 [1] : vector<8x8xf32> to vector<8xf32>
    %96 = vector.shape_cast %95 : vector<8xf32> to vector<8x1xf32>
    %97 = vector.broadcast %96 : vector<8x1xf32> to vector<8x8xf32>
    %98 = arith.subf %64, %97 : vector<8x8xf32>
    %99 = math.exp %98 : vector<8x8xf32>
    %cst_30 = arith.constant dense<0.000000e+00> : vector<8x8xf32>
    %100 = tpu.matmul %99, %10, %cst_30 {dimension_numbers = #tpu.dot_dimension_numbers<[1], [0], [0], [1], [0, 0, 1, 1], [], []>} : vector<8x8xf32>, vector<8x8xf32>, vector<8x8xf32> -> vector<8x8xf32>
    %cst_31 = arith.constant 1.000000e-30 : f32
    %101 = vector.broadcast %cst_31 : f32 to vector<8x8xf32>
    %102 = arith.addf %100, %101 : vector<8x8xf32>
    %103 = math.log %102 : vector<8x8xf32>
    %104 = vector.broadcast %96 : vector<8x1xf32> to vector<8x8xf32>
    %105 = arith.addf %104, %103 : vector<8x8xf32>
    %106 = arith.addf %105, %94 : vector<8x8xf32>
    %107 = vector.broadcast %70 : vector<8x1xf32> to vector<8x8xf32>
    %108 = arith.mulf %106, %107 : vector<8x8xf32>
    %cst_32 = arith.constant 1.000000e+00 : f32
    %109 = vector.broadcast %cst_32 : f32 to vector<8x1xf32>
    %110 = arith.subf %109, %70 : vector<8x1xf32>
    %111 = vector.broadcast %110 : vector<8x1xf32> to vector<8x8xf32>
    %112 = arith.mulf %64, %111 : vector<8x8xf32>
    %113 = arith.addf %108, %112 : vector<8x8xf32>
    %114 = arith.mulf %94, %71 : vector<8x8xf32>
    %cst_33 = arith.constant dense<0.000000e+00> : vector<8xf32>
    %115 = vector.multi_reduction <add>, %114, %cst_33 [1] : vector<8x8xf32> to vector<8xf32>
    %116 = vector.shape_cast %115 : vector<8xf32> to vector<8x1xf32>
    %117 = arith.addf %68, %116 : vector<8x1xf32>
    %118 = vector.extract_strided_slice %5 {offsets = [16, 0], sizes = [8, 128], strides = [1, 1]} : vector<64x128xf32> to vector<8x128xf32>
    %119 = vector.extract_strided_slice %6 {offsets = [16, 0], sizes = [8, 1], strides = [1, 1]} : vector<64x1xf32> to vector<8x1xf32>
    %120 = vector.extract_strided_slice %7 {offsets = [16, 0], sizes = [8, 8], strides = [1, 1]} : vector<64x8xf32> to vector<8x8xf32>
    %121 = vector.extract_strided_slice %89 {offsets = [0, 0], sizes = [8, 128], strides = [1, 1]} : vector<8x256xf32> to vector<8x128xf32>
    %122 = arith.addf %118, %121 : vector<8x128xf32>
    %123 = arith.negf %122 : vector<8x128xf32>
    %124 = math.exp %123 : vector<8x128xf32>
    %cst_34 = arith.constant 1.000000e+00 : f32
    %125 = vector.broadcast %cst_34 : f32 to vector<8x128xf32>
    %126 = arith.addf %125, %124 : vector<8x128xf32>
    %127 = arith.divf %125, %126 : vector<8x128xf32>
    %128 = math.tanh %122 : vector<8x128xf32>
    %129 = vector.extract_strided_slice %127 {offsets = [0, 0], sizes = [8, 32], strides = [1, 1]} : vector<8x128xf32> to vector<8x32xf32>
    %130 = vector.extract_strided_slice %127 {offsets = [0, 32], sizes = [8, 32], strides = [1, 1]} : vector<8x128xf32> to vector<8x32xf32>
    %131 = vector.extract_strided_slice %127 {offsets = [0, 96], sizes = [8, 32], strides = [1, 1]} : vector<8x128xf32> to vector<8x32xf32>
    %132 = vector.extract_strided_slice %128 {offsets = [0, 64], sizes = [8, 32], strides = [1, 1]} : vector<8x128xf32> to vector<8x32xf32>
    %133 = arith.mulf %130, %86 : vector<8x32xf32>
    %134 = arith.mulf %129, %132 : vector<8x32xf32>
    %135 = arith.addf %133, %134 : vector<8x32xf32>
    %136 = math.tanh %135 : vector<8x32xf32>
    %137 = arith.mulf %131, %136 : vector<8x32xf32>
    %cst_35 = arith.constant dense<0.000000e+00> : vector<8x256xf32>
    %138 = tpu.matmul %137, %8, %cst_35 {dimension_numbers = #tpu.dot_dimension_numbers<[1], [0], [0], [1], [0, 0, 1, 1], [], []>} : vector<8x32xf32>, vector<32x256xf32>, vector<8x256xf32> -> vector<8x256xf32>
    %139 = vector.extract_strided_slice %138 {offsets = [0, 128], sizes = [8, 8], strides = [1, 1]} : vector<8x256xf32> to vector<8x8xf32>
    %140 = vector.broadcast %9 : vector<1x8xf32> to vector<8x8xf32>
    %141 = arith.addf %139, %140 : vector<8x8xf32>
    %142 = vector.broadcast %119 : vector<8x1xf32> to vector<8x8xf32>
    %143 = arith.mulf %141, %142 : vector<8x8xf32>
    %cst_36 = arith.constant dense<0xFF800000> : vector<8xf32>
    %144 = vector.multi_reduction <maximumf>, %113, %cst_36 [1] : vector<8x8xf32> to vector<8xf32>
    %145 = vector.shape_cast %144 : vector<8xf32> to vector<8x1xf32>
    %146 = vector.broadcast %145 : vector<8x1xf32> to vector<8x8xf32>
    %147 = arith.subf %113, %146 : vector<8x8xf32>
    %148 = math.exp %147 : vector<8x8xf32>
    %cst_37 = arith.constant dense<0.000000e+00> : vector<8x8xf32>
    %149 = tpu.matmul %148, %10, %cst_37 {dimension_numbers = #tpu.dot_dimension_numbers<[1], [0], [0], [1], [0, 0, 1, 1], [], []>} : vector<8x8xf32>, vector<8x8xf32>, vector<8x8xf32> -> vector<8x8xf32>
    %cst_38 = arith.constant 1.000000e-30 : f32
    %150 = vector.broadcast %cst_38 : f32 to vector<8x8xf32>
    %151 = arith.addf %149, %150 : vector<8x8xf32>
    %152 = math.log %151 : vector<8x8xf32>
    %153 = vector.broadcast %145 : vector<8x1xf32> to vector<8x8xf32>
    %154 = arith.addf %153, %152 : vector<8x8xf32>
    %155 = arith.addf %154, %143 : vector<8x8xf32>
    %156 = vector.broadcast %119 : vector<8x1xf32> to vector<8x8xf32>
    %157 = arith.mulf %155, %156 : vector<8x8xf32>
    %cst_39 = arith.constant 1.000000e+00 : f32
    %158 = vector.broadcast %cst_39 : f32 to vector<8x1xf32>
    %159 = arith.subf %158, %119 : vector<8x1xf32>
    %160 = vector.broadcast %159 : vector<8x1xf32> to vector<8x8xf32>
    %161 = arith.mulf %113, %160 : vector<8x8xf32>
    %162 = arith.addf %157, %161 : vector<8x8xf32>
    %163 = arith.mulf %143, %120 : vector<8x8xf32>
    %cst_40 = arith.constant dense<0.000000e+00> : vector<8xf32>
    %164 = vector.multi_reduction <add>, %163, %cst_40 [1] : vector<8x8xf32> to vector<8xf32>
    %165 = vector.shape_cast %164 : vector<8xf32> to vector<8x1xf32>
    %166 = arith.addf %117, %165 : vector<8x1xf32>
    %167 = vector.extract_strided_slice %5 {offsets = [24, 0], sizes = [8, 128], strides = [1, 1]} : vector<64x128xf32> to vector<8x128xf32>
    %168 = vector.extract_strided_slice %6 {offsets = [24, 0], sizes = [8, 1], strides = [1, 1]} : vector<64x1xf32> to vector<8x1xf32>
    %169 = vector.extract_strided_slice %7 {offsets = [24, 0], sizes = [8, 8], strides = [1, 1]} : vector<64x8xf32> to vector<8x8xf32>
    %170 = vector.extract_strided_slice %138 {offsets = [0, 0], sizes = [8, 128], strides = [1, 1]} : vector<8x256xf32> to vector<8x128xf32>
    %171 = arith.addf %167, %170 : vector<8x128xf32>
    %172 = arith.negf %171 : vector<8x128xf32>
    %173 = math.exp %172 : vector<8x128xf32>
    %cst_41 = arith.constant 1.000000e+00 : f32
    %174 = vector.broadcast %cst_41 : f32 to vector<8x128xf32>
    %175 = arith.addf %174, %173 : vector<8x128xf32>
    %176 = arith.divf %174, %175 : vector<8x128xf32>
    %177 = math.tanh %171 : vector<8x128xf32>
    %178 = vector.extract_strided_slice %176 {offsets = [0, 0], sizes = [8, 32], strides = [1, 1]} : vector<8x128xf32> to vector<8x32xf32>
    %179 = vector.extract_strided_slice %176 {offsets = [0, 32], sizes = [8, 32], strides = [1, 1]} : vector<8x128xf32> to vector<8x32xf32>
    %180 = vector.extract_strided_slice %176 {offsets = [0, 96], sizes = [8, 32], strides = [1, 1]} : vector<8x128xf32> to vector<8x32xf32>
    %181 = vector.extract_strided_slice %177 {offsets = [0, 64], sizes = [8, 32], strides = [1, 1]} : vector<8x128xf32> to vector<8x32xf32>
    %182 = arith.mulf %179, %135 : vector<8x32xf32>
    %183 = arith.mulf %178, %181 : vector<8x32xf32>
    %184 = arith.addf %182, %183 : vector<8x32xf32>
    %185 = math.tanh %184 : vector<8x32xf32>
    %186 = arith.mulf %180, %185 : vector<8x32xf32>
    %cst_42 = arith.constant dense<0.000000e+00> : vector<8x256xf32>
    %187 = tpu.matmul %186, %8, %cst_42 {dimension_numbers = #tpu.dot_dimension_numbers<[1], [0], [0], [1], [0, 0, 1, 1], [], []>} : vector<8x32xf32>, vector<32x256xf32>, vector<8x256xf32> -> vector<8x256xf32>
    %188 = vector.extract_strided_slice %187 {offsets = [0, 128], sizes = [8, 8], strides = [1, 1]} : vector<8x256xf32> to vector<8x8xf32>
    %189 = vector.broadcast %9 : vector<1x8xf32> to vector<8x8xf32>
    %190 = arith.addf %188, %189 : vector<8x8xf32>
    %191 = vector.broadcast %168 : vector<8x1xf32> to vector<8x8xf32>
    %192 = arith.mulf %190, %191 : vector<8x8xf32>
    %cst_43 = arith.constant dense<0xFF800000> : vector<8xf32>
    %193 = vector.multi_reduction <maximumf>, %162, %cst_43 [1] : vector<8x8xf32> to vector<8xf32>
    %194 = vector.shape_cast %193 : vector<8xf32> to vector<8x1xf32>
    %195 = vector.broadcast %194 : vector<8x1xf32> to vector<8x8xf32>
    %196 = arith.subf %162, %195 : vector<8x8xf32>
    %197 = math.exp %196 : vector<8x8xf32>
    %cst_44 = arith.constant dense<0.000000e+00> : vector<8x8xf32>
    %198 = tpu.matmul %197, %10, %cst_44 {dimension_numbers = #tpu.dot_dimension_numbers<[1], [0], [0], [1], [0, 0, 1, 1], [], []>} : vector<8x8xf32>, vector<8x8xf32>, vector<8x8xf32> -> vector<8x8xf32>
    %cst_45 = arith.constant 1.000000e-30 : f32
    %199 = vector.broadcast %cst_45 : f32 to vector<8x8xf32>
    %200 = arith.addf %198, %199 : vector<8x8xf32>
    %201 = math.log %200 : vector<8x8xf32>
    %202 = vector.broadcast %194 : vector<8x1xf32> to vector<8x8xf32>
    %203 = arith.addf %202, %201 : vector<8x8xf32>
    %204 = arith.addf %203, %192 : vector<8x8xf32>
    %205 = vector.broadcast %168 : vector<8x1xf32> to vector<8x8xf32>
    %206 = arith.mulf %204, %205 : vector<8x8xf32>
    %cst_46 = arith.constant 1.000000e+00 : f32
    %207 = vector.broadcast %cst_46 : f32 to vector<8x1xf32>
    %208 = arith.subf %207, %168 : vector<8x1xf32>
    %209 = vector.broadcast %208 : vector<8x1xf32> to vector<8x8xf32>
    %210 = arith.mulf %162, %209 : vector<8x8xf32>
    %211 = arith.addf %206, %210 : vector<8x8xf32>
    %212 = arith.mulf %192, %169 : vector<8x8xf32>
    %cst_47 = arith.constant dense<0.000000e+00> : vector<8xf32>
    %213 = vector.multi_reduction <add>, %212, %cst_47 [1] : vector<8x8xf32> to vector<8xf32>
    %214 = vector.shape_cast %213 : vector<8xf32> to vector<8x1xf32>
    %215 = arith.addf %166, %214 : vector<8x1xf32>
    %216 = vector.extract_strided_slice %5 {offsets = [32, 0], sizes = [8, 128], strides = [1, 1]} : vector<64x128xf32> to vector<8x128xf32>
    %217 = vector.extract_strided_slice %6 {offsets = [32, 0], sizes = [8, 1], strides = [1, 1]} : vector<64x1xf32> to vector<8x1xf32>
    %218 = vector.extract_strided_slice %7 {offsets = [32, 0], sizes = [8, 8], strides = [1, 1]} : vector<64x8xf32> to vector<8x8xf32>
    %219 = vector.extract_strided_slice %187 {offsets = [0, 0], sizes = [8, 128], strides = [1, 1]} : vector<8x256xf32> to vector<8x128xf32>
    %220 = arith.addf %216, %219 : vector<8x128xf32>
    %221 = arith.negf %220 : vector<8x128xf32>
    %222 = math.exp %221 : vector<8x128xf32>
    %cst_48 = arith.constant 1.000000e+00 : f32
    %223 = vector.broadcast %cst_48 : f32 to vector<8x128xf32>
    %224 = arith.addf %223, %222 : vector<8x128xf32>
    %225 = arith.divf %223, %224 : vector<8x128xf32>
    %226 = math.tanh %220 : vector<8x128xf32>
    %227 = vector.extract_strided_slice %225 {offsets = [0, 0], sizes = [8, 32], strides = [1, 1]} : vector<8x128xf32> to vector<8x32xf32>
    %228 = vector.extract_strided_slice %225 {offsets = [0, 32], sizes = [8, 32], strides = [1, 1]} : vector<8x128xf32> to vector<8x32xf32>
    %229 = vector.extract_strided_slice %225 {offsets = [0, 96], sizes = [8, 32], strides = [1, 1]} : vector<8x128xf32> to vector<8x32xf32>
    %230 = vector.extract_strided_slice %226 {offsets = [0, 64], sizes = [8, 32], strides = [1, 1]} : vector<8x128xf32> to vector<8x32xf32>
    %231 = arith.mulf %228, %184 : vector<8x32xf32>
    %232 = arith.mulf %227, %230 : vector<8x32xf32>
    %233 = arith.addf %231, %232 : vector<8x32xf32>
    %234 = math.tanh %233 : vector<8x32xf32>
    %235 = arith.mulf %229, %234 : vector<8x32xf32>
    %cst_49 = arith.constant dense<0.000000e+00> : vector<8x256xf32>
    %236 = tpu.matmul %235, %8, %cst_49 {dimension_numbers = #tpu.dot_dimension_numbers<[1], [0], [0], [1], [0, 0, 1, 1], [], []>} : vector<8x32xf32>, vector<32x256xf32>, vector<8x256xf32> -> vector<8x256xf32>
    %237 = vector.extract_strided_slice %236 {offsets = [0, 128], sizes = [8, 8], strides = [1, 1]} : vector<8x256xf32> to vector<8x8xf32>
    %238 = vector.broadcast %9 : vector<1x8xf32> to vector<8x8xf32>
    %239 = arith.addf %237, %238 : vector<8x8xf32>
    %240 = vector.broadcast %217 : vector<8x1xf32> to vector<8x8xf32>
    %241 = arith.mulf %239, %240 : vector<8x8xf32>
    %cst_50 = arith.constant dense<0xFF800000> : vector<8xf32>
    %242 = vector.multi_reduction <maximumf>, %211, %cst_50 [1] : vector<8x8xf32> to vector<8xf32>
    %243 = vector.shape_cast %242 : vector<8xf32> to vector<8x1xf32>
    %244 = vector.broadcast %243 : vector<8x1xf32> to vector<8x8xf32>
    %245 = arith.subf %211, %244 : vector<8x8xf32>
    %246 = math.exp %245 : vector<8x8xf32>
    %cst_51 = arith.constant dense<0.000000e+00> : vector<8x8xf32>
    %247 = tpu.matmul %246, %10, %cst_51 {dimension_numbers = #tpu.dot_dimension_numbers<[1], [0], [0], [1], [0, 0, 1, 1], [], []>} : vector<8x8xf32>, vector<8x8xf32>, vector<8x8xf32> -> vector<8x8xf32>
    %cst_52 = arith.constant 1.000000e-30 : f32
    %248 = vector.broadcast %cst_52 : f32 to vector<8x8xf32>
    %249 = arith.addf %247, %248 : vector<8x8xf32>
    %250 = math.log %249 : vector<8x8xf32>
    %251 = vector.broadcast %243 : vector<8x1xf32> to vector<8x8xf32>
    %252 = arith.addf %251, %250 : vector<8x8xf32>
    %253 = arith.addf %252, %241 : vector<8x8xf32>
    %254 = vector.broadcast %217 : vector<8x1xf32> to vector<8x8xf32>
    %255 = arith.mulf %253, %254 : vector<8x8xf32>
    %cst_53 = arith.constant 1.000000e+00 : f32
    %256 = vector.broadcast %cst_53 : f32 to vector<8x1xf32>
    %257 = arith.subf %256, %217 : vector<8x1xf32>
    %258 = vector.broadcast %257 : vector<8x1xf32> to vector<8x8xf32>
    %259 = arith.mulf %211, %258 : vector<8x8xf32>
    %260 = arith.addf %255, %259 : vector<8x8xf32>
    %261 = arith.mulf %241, %218 : vector<8x8xf32>
    %cst_54 = arith.constant dense<0.000000e+00> : vector<8xf32>
    %262 = vector.multi_reduction <add>, %261, %cst_54 [1] : vector<8x8xf32> to vector<8xf32>
    %263 = vector.shape_cast %262 : vector<8xf32> to vector<8x1xf32>
    %264 = arith.addf %215, %263 : vector<8x1xf32>
    %265 = vector.extract_strided_slice %5 {offsets = [40, 0], sizes = [8, 128], strides = [1, 1]} : vector<64x128xf32> to vector<8x128xf32>
    %266 = vector.extract_strided_slice %6 {offsets = [40, 0], sizes = [8, 1], strides = [1, 1]} : vector<64x1xf32> to vector<8x1xf32>
    %267 = vector.extract_strided_slice %7 {offsets = [40, 0], sizes = [8, 8], strides = [1, 1]} : vector<64x8xf32> to vector<8x8xf32>
    %268 = vector.extract_strided_slice %236 {offsets = [0, 0], sizes = [8, 128], strides = [1, 1]} : vector<8x256xf32> to vector<8x128xf32>
    %269 = arith.addf %265, %268 : vector<8x128xf32>
    %270 = arith.negf %269 : vector<8x128xf32>
    %271 = math.exp %270 : vector<8x128xf32>
    %cst_55 = arith.constant 1.000000e+00 : f32
    %272 = vector.broadcast %cst_55 : f32 to vector<8x128xf32>
    %273 = arith.addf %272, %271 : vector<8x128xf32>
    %274 = arith.divf %272, %273 : vector<8x128xf32>
    %275 = math.tanh %269 : vector<8x128xf32>
    %276 = vector.extract_strided_slice %274 {offsets = [0, 0], sizes = [8, 32], strides = [1, 1]} : vector<8x128xf32> to vector<8x32xf32>
    %277 = vector.extract_strided_slice %274 {offsets = [0, 32], sizes = [8, 32], strides = [1, 1]} : vector<8x128xf32> to vector<8x32xf32>
    %278 = vector.extract_strided_slice %274 {offsets = [0, 96], sizes = [8, 32], strides = [1, 1]} : vector<8x128xf32> to vector<8x32xf32>
    %279 = vector.extract_strided_slice %275 {offsets = [0, 64], sizes = [8, 32], strides = [1, 1]} : vector<8x128xf32> to vector<8x32xf32>
    %280 = arith.mulf %277, %233 : vector<8x32xf32>
    %281 = arith.mulf %276, %279 : vector<8x32xf32>
    %282 = arith.addf %280, %281 : vector<8x32xf32>
    %283 = math.tanh %282 : vector<8x32xf32>
    %284 = arith.mulf %278, %283 : vector<8x32xf32>
    %cst_56 = arith.constant dense<0.000000e+00> : vector<8x256xf32>
    %285 = tpu.matmul %284, %8, %cst_56 {dimension_numbers = #tpu.dot_dimension_numbers<[1], [0], [0], [1], [0, 0, 1, 1], [], []>} : vector<8x32xf32>, vector<32x256xf32>, vector<8x256xf32> -> vector<8x256xf32>
    %286 = vector.extract_strided_slice %285 {offsets = [0, 128], sizes = [8, 8], strides = [1, 1]} : vector<8x256xf32> to vector<8x8xf32>
    %287 = vector.broadcast %9 : vector<1x8xf32> to vector<8x8xf32>
    %288 = arith.addf %286, %287 : vector<8x8xf32>
    %289 = vector.broadcast %266 : vector<8x1xf32> to vector<8x8xf32>
    %290 = arith.mulf %288, %289 : vector<8x8xf32>
    %cst_57 = arith.constant dense<0xFF800000> : vector<8xf32>
    %291 = vector.multi_reduction <maximumf>, %260, %cst_57 [1] : vector<8x8xf32> to vector<8xf32>
    %292 = vector.shape_cast %291 : vector<8xf32> to vector<8x1xf32>
    %293 = vector.broadcast %292 : vector<8x1xf32> to vector<8x8xf32>
    %294 = arith.subf %260, %293 : vector<8x8xf32>
    %295 = math.exp %294 : vector<8x8xf32>
    %cst_58 = arith.constant dense<0.000000e+00> : vector<8x8xf32>
    %296 = tpu.matmul %295, %10, %cst_58 {dimension_numbers = #tpu.dot_dimension_numbers<[1], [0], [0], [1], [0, 0, 1, 1], [], []>} : vector<8x8xf32>, vector<8x8xf32>, vector<8x8xf32> -> vector<8x8xf32>
    %cst_59 = arith.constant 1.000000e-30 : f32
    %297 = vector.broadcast %cst_59 : f32 to vector<8x8xf32>
    %298 = arith.addf %296, %297 : vector<8x8xf32>
    %299 = math.log %298 : vector<8x8xf32>
    %300 = vector.broadcast %292 : vector<8x1xf32> to vector<8x8xf32>
    %301 = arith.addf %300, %299 : vector<8x8xf32>
    %302 = arith.addf %301, %290 : vector<8x8xf32>
    %303 = vector.broadcast %266 : vector<8x1xf32> to vector<8x8xf32>
    %304 = arith.mulf %302, %303 : vector<8x8xf32>
    %cst_60 = arith.constant 1.000000e+00 : f32
    %305 = vector.broadcast %cst_60 : f32 to vector<8x1xf32>
    %306 = arith.subf %305, %266 : vector<8x1xf32>
    %307 = vector.broadcast %306 : vector<8x1xf32> to vector<8x8xf32>
    %308 = arith.mulf %260, %307 : vector<8x8xf32>
    %309 = arith.addf %304, %308 : vector<8x8xf32>
    %310 = arith.mulf %290, %267 : vector<8x8xf32>
    %cst_61 = arith.constant dense<0.000000e+00> : vector<8xf32>
    %311 = vector.multi_reduction <add>, %310, %cst_61 [1] : vector<8x8xf32> to vector<8xf32>
    %312 = vector.shape_cast %311 : vector<8xf32> to vector<8x1xf32>
    %313 = arith.addf %264, %312 : vector<8x1xf32>
    %314 = vector.extract_strided_slice %5 {offsets = [48, 0], sizes = [8, 128], strides = [1, 1]} : vector<64x128xf32> to vector<8x128xf32>
    %315 = vector.extract_strided_slice %6 {offsets = [48, 0], sizes = [8, 1], strides = [1, 1]} : vector<64x1xf32> to vector<8x1xf32>
    %316 = vector.extract_strided_slice %7 {offsets = [48, 0], sizes = [8, 8], strides = [1, 1]} : vector<64x8xf32> to vector<8x8xf32>
    %317 = vector.extract_strided_slice %285 {offsets = [0, 0], sizes = [8, 128], strides = [1, 1]} : vector<8x256xf32> to vector<8x128xf32>
    %318 = arith.addf %314, %317 : vector<8x128xf32>
    %319 = arith.negf %318 : vector<8x128xf32>
    %320 = math.exp %319 : vector<8x128xf32>
    %cst_62 = arith.constant 1.000000e+00 : f32
    %321 = vector.broadcast %cst_62 : f32 to vector<8x128xf32>
    %322 = arith.addf %321, %320 : vector<8x128xf32>
    %323 = arith.divf %321, %322 : vector<8x128xf32>
    %324 = math.tanh %318 : vector<8x128xf32>
    %325 = vector.extract_strided_slice %323 {offsets = [0, 0], sizes = [8, 32], strides = [1, 1]} : vector<8x128xf32> to vector<8x32xf32>
    %326 = vector.extract_strided_slice %323 {offsets = [0, 32], sizes = [8, 32], strides = [1, 1]} : vector<8x128xf32> to vector<8x32xf32>
    %327 = vector.extract_strided_slice %323 {offsets = [0, 96], sizes = [8, 32], strides = [1, 1]} : vector<8x128xf32> to vector<8x32xf32>
    %328 = vector.extract_strided_slice %324 {offsets = [0, 64], sizes = [8, 32], strides = [1, 1]} : vector<8x128xf32> to vector<8x32xf32>
    %329 = arith.mulf %326, %282 : vector<8x32xf32>
    %330 = arith.mulf %325, %328 : vector<8x32xf32>
    %331 = arith.addf %329, %330 : vector<8x32xf32>
    %332 = math.tanh %331 : vector<8x32xf32>
    %333 = arith.mulf %327, %332 : vector<8x32xf32>
    %cst_63 = arith.constant dense<0.000000e+00> : vector<8x256xf32>
    %334 = tpu.matmul %333, %8, %cst_63 {dimension_numbers = #tpu.dot_dimension_numbers<[1], [0], [0], [1], [0, 0, 1, 1], [], []>} : vector<8x32xf32>, vector<32x256xf32>, vector<8x256xf32> -> vector<8x256xf32>
    %335 = vector.extract_strided_slice %334 {offsets = [0, 128], sizes = [8, 8], strides = [1, 1]} : vector<8x256xf32> to vector<8x8xf32>
    %336 = vector.broadcast %9 : vector<1x8xf32> to vector<8x8xf32>
    %337 = arith.addf %335, %336 : vector<8x8xf32>
    %338 = vector.broadcast %315 : vector<8x1xf32> to vector<8x8xf32>
    %339 = arith.mulf %337, %338 : vector<8x8xf32>
    %cst_64 = arith.constant dense<0xFF800000> : vector<8xf32>
    %340 = vector.multi_reduction <maximumf>, %309, %cst_64 [1] : vector<8x8xf32> to vector<8xf32>
    %341 = vector.shape_cast %340 : vector<8xf32> to vector<8x1xf32>
    %342 = vector.broadcast %341 : vector<8x1xf32> to vector<8x8xf32>
    %343 = arith.subf %309, %342 : vector<8x8xf32>
    %344 = math.exp %343 : vector<8x8xf32>
    %cst_65 = arith.constant dense<0.000000e+00> : vector<8x8xf32>
    %345 = tpu.matmul %344, %10, %cst_65 {dimension_numbers = #tpu.dot_dimension_numbers<[1], [0], [0], [1], [0, 0, 1, 1], [], []>} : vector<8x8xf32>, vector<8x8xf32>, vector<8x8xf32> -> vector<8x8xf32>
    %cst_66 = arith.constant 1.000000e-30 : f32
    %346 = vector.broadcast %cst_66 : f32 to vector<8x8xf32>
    %347 = arith.addf %345, %346 : vector<8x8xf32>
    %348 = math.log %347 : vector<8x8xf32>
    %349 = vector.broadcast %341 : vector<8x1xf32> to vector<8x8xf32>
    %350 = arith.addf %349, %348 : vector<8x8xf32>
    %351 = arith.addf %350, %339 : vector<8x8xf32>
    %352 = vector.broadcast %315 : vector<8x1xf32> to vector<8x8xf32>
    %353 = arith.mulf %351, %352 : vector<8x8xf32>
    %cst_67 = arith.constant 1.000000e+00 : f32
    %354 = vector.broadcast %cst_67 : f32 to vector<8x1xf32>
    %355 = arith.subf %354, %315 : vector<8x1xf32>
    %356 = vector.broadcast %355 : vector<8x1xf32> to vector<8x8xf32>
    %357 = arith.mulf %309, %356 : vector<8x8xf32>
    %358 = arith.addf %353, %357 : vector<8x8xf32>
    %359 = arith.mulf %339, %316 : vector<8x8xf32>
    %cst_68 = arith.constant dense<0.000000e+00> : vector<8xf32>
    %360 = vector.multi_reduction <add>, %359, %cst_68 [1] : vector<8x8xf32> to vector<8xf32>
    %361 = vector.shape_cast %360 : vector<8xf32> to vector<8x1xf32>
    %362 = arith.addf %313, %361 : vector<8x1xf32>
    %363 = vector.extract_strided_slice %5 {offsets = [56, 0], sizes = [8, 128], strides = [1, 1]} : vector<64x128xf32> to vector<8x128xf32>
    %364 = vector.extract_strided_slice %6 {offsets = [56, 0], sizes = [8, 1], strides = [1, 1]} : vector<64x1xf32> to vector<8x1xf32>
    %365 = vector.extract_strided_slice %7 {offsets = [56, 0], sizes = [8, 8], strides = [1, 1]} : vector<64x8xf32> to vector<8x8xf32>
    %366 = vector.extract_strided_slice %334 {offsets = [0, 0], sizes = [8, 128], strides = [1, 1]} : vector<8x256xf32> to vector<8x128xf32>
    %367 = arith.addf %363, %366 : vector<8x128xf32>
    %368 = arith.negf %367 : vector<8x128xf32>
    %369 = math.exp %368 : vector<8x128xf32>
    %cst_69 = arith.constant 1.000000e+00 : f32
    %370 = vector.broadcast %cst_69 : f32 to vector<8x128xf32>
    %371 = arith.addf %370, %369 : vector<8x128xf32>
    %372 = arith.divf %370, %371 : vector<8x128xf32>
    %373 = math.tanh %367 : vector<8x128xf32>
    %374 = vector.extract_strided_slice %372 {offsets = [0, 0], sizes = [8, 32], strides = [1, 1]} : vector<8x128xf32> to vector<8x32xf32>
    %375 = vector.extract_strided_slice %372 {offsets = [0, 32], sizes = [8, 32], strides = [1, 1]} : vector<8x128xf32> to vector<8x32xf32>
    %376 = vector.extract_strided_slice %372 {offsets = [0, 96], sizes = [8, 32], strides = [1, 1]} : vector<8x128xf32> to vector<8x32xf32>
    %377 = vector.extract_strided_slice %373 {offsets = [0, 64], sizes = [8, 32], strides = [1, 1]} : vector<8x128xf32> to vector<8x32xf32>
    %378 = arith.mulf %375, %331 : vector<8x32xf32>
    %379 = arith.mulf %374, %377 : vector<8x32xf32>
    %380 = arith.addf %378, %379 : vector<8x32xf32>
    %381 = math.tanh %380 : vector<8x32xf32>
    %382 = arith.mulf %376, %381 : vector<8x32xf32>
    %cst_70 = arith.constant dense<0.000000e+00> : vector<8x256xf32>
    %383 = tpu.matmul %382, %8, %cst_70 {dimension_numbers = #tpu.dot_dimension_numbers<[1], [0], [0], [1], [0, 0, 1, 1], [], []>} : vector<8x32xf32>, vector<32x256xf32>, vector<8x256xf32> -> vector<8x256xf32>
    %384 = vector.extract_strided_slice %383 {offsets = [0, 128], sizes = [8, 8], strides = [1, 1]} : vector<8x256xf32> to vector<8x8xf32>
    %385 = vector.broadcast %9 : vector<1x8xf32> to vector<8x8xf32>
    %386 = arith.addf %384, %385 : vector<8x8xf32>
    %387 = vector.broadcast %364 : vector<8x1xf32> to vector<8x8xf32>
    %388 = arith.mulf %386, %387 : vector<8x8xf32>
    %cst_71 = arith.constant dense<0xFF800000> : vector<8xf32>
    %389 = vector.multi_reduction <maximumf>, %358, %cst_71 [1] : vector<8x8xf32> to vector<8xf32>
    %390 = vector.shape_cast %389 : vector<8xf32> to vector<8x1xf32>
    %391 = vector.broadcast %390 : vector<8x1xf32> to vector<8x8xf32>
    %392 = arith.subf %358, %391 : vector<8x8xf32>
    %393 = math.exp %392 : vector<8x8xf32>
    %cst_72 = arith.constant dense<0.000000e+00> : vector<8x8xf32>
    %394 = tpu.matmul %393, %10, %cst_72 {dimension_numbers = #tpu.dot_dimension_numbers<[1], [0], [0], [1], [0, 0, 1, 1], [], []>} : vector<8x8xf32>, vector<8x8xf32>, vector<8x8xf32> -> vector<8x8xf32>
    %cst_73 = arith.constant 1.000000e-30 : f32
    %395 = vector.broadcast %cst_73 : f32 to vector<8x8xf32>
    %396 = arith.addf %394, %395 : vector<8x8xf32>
    %397 = math.log %396 : vector<8x8xf32>
    %398 = vector.broadcast %390 : vector<8x1xf32> to vector<8x8xf32>
    %399 = arith.addf %398, %397 : vector<8x8xf32>
    %400 = arith.addf %399, %388 : vector<8x8xf32>
    %401 = vector.broadcast %364 : vector<8x1xf32> to vector<8x8xf32>
    %402 = arith.mulf %400, %401 : vector<8x8xf32>
    %cst_74 = arith.constant 1.000000e+00 : f32
    %403 = vector.broadcast %cst_74 : f32 to vector<8x1xf32>
    %404 = arith.subf %403, %364 : vector<8x1xf32>
    %405 = vector.broadcast %404 : vector<8x1xf32> to vector<8x8xf32>
    %406 = arith.mulf %358, %405 : vector<8x8xf32>
    %407 = arith.addf %402, %406 : vector<8x8xf32>
    %408 = arith.mulf %388, %365 : vector<8x8xf32>
    %cst_75 = arith.constant dense<0.000000e+00> : vector<8xf32>
    %409 = vector.multi_reduction <add>, %408, %cst_75 [1] : vector<8x8xf32> to vector<8xf32>
    %410 = vector.shape_cast %409 : vector<8xf32> to vector<8x1xf32>
    %411 = arith.addf %362, %410 : vector<8x1xf32>
    %cst_76 = arith.constant dense<0xFF800000> : vector<8xf32>
    %412 = vector.multi_reduction <maximumf>, %407, %cst_76 [1] : vector<8x8xf32> to vector<8xf32>
    %413 = vector.shape_cast %412 : vector<8xf32> to vector<8x1xf32>
    %414 = vector.broadcast %413 : vector<8x1xf32> to vector<8x8xf32>
    %415 = arith.subf %407, %414 : vector<8x8xf32>
    %416 = math.exp %415 : vector<8x8xf32>
    %cst_77 = arith.constant dense<0.000000e+00> : vector<8xf32>
    %417 = vector.multi_reduction <add>, %416, %cst_77 [1] : vector<8x8xf32> to vector<8xf32>
    %418 = vector.shape_cast %417 : vector<8xf32> to vector<8x1xf32>
    %419 = math.log %418 : vector<8x1xf32>
    %420 = arith.addf %413, %419 : vector<8x1xf32>
    %421 = arith.subf %420, %411 : vector<8x1xf32>
    %c0_78 = arith.constant 0 : index
    %c0_79 = arith.constant 0 : index
    %422 = vector.load %arg4[%c0_78, %c0_79] : memref<8x1xf32, #tpu.memory_space<vmem>>, vector<8x1xf32>
    %423 = arith.subf %421, %422 : vector<8x1xf32>
    %424 = vector.shape_cast %423 : vector<8x1xf32> to vector<8x1xf32>
    %425 = vector.broadcast %424 : vector<8x1xf32> to vector<8x128xf32>
    %c0_80 = arith.constant 0 : index
    %c0_81 = arith.constant 0 : index
    %426 = vector.load %arg10[%c0_80, %c0_81] : memref<8x128xf32, #tpu.memory_space<vmem>>, vector<8x128xf32>
    tpu.vector_store %arg10[%c0_80, %c0_81], %425 {strides = array<i32>} : memref<8x128xf32, #tpu.memory_space<vmem>>, vector<8x128xf32>,
    return
  }
  func.func @transform_0(%arg0: i32) -> (i32, i32) {
    %c0_i32 = arith.constant 0 : i32
    %c0_i32_0 = arith.constant 0 : i32
    %c0_i32_1 = arith.constant 0 : i32
    return %c0_i32, %c0_i32_0 : i32, i32
  }
  func.func @transform_1(%arg0: i32) -> (i32, i32) {
    %c0_i32 = arith.constant 0 : i32
    %c0_i32_0 = arith.constant 0 : i32
    %c0_i32_1 = arith.constant 0 : i32
    return %c0_i32, %c0_i32_0 : i32, i32
  }
  func.func @transform_2(%arg0: i32) -> (i32, i32) {
    %c0_i32 = arith.constant 0 : i32
    %c0_i32_0 = arith.constant 0 : i32
    %c0_i32_1 = arith.constant 0 : i32
    return %c0_i32, %c0_i32_0 : i32, i32
  }
  func.func @transform_3(%arg0: i32) -> (i32, i32) {
    %c0_i32 = arith.constant 0 : i32
    %c0_i32_0 = arith.constant 0 : i32
    %c0_i32_1 = arith.constant 0 : i32
    return %c0_i32, %c0_i32_0 : i32, i32
  }
  func.func @transform_4(%arg0: i32) -> (i32, i32) {
    %c0_i32 = arith.constant 0 : i32
    %c0_i32_0 = arith.constant 0 : i32
    %c0_i32_1 = arith.constant 0 : i32
    return %c0_i32, %c0_i32_0 : i32, i32
  }
  func.func @transform_5(%arg0: i32) -> (i32, i32) {
    %c0_i32 = arith.constant 0 : i32
    %c0_i32_0 = arith.constant 0 : i32
    %c0_i32_1 = arith.constant 0 : i32
    return %c0_i32, %c0_i32_0 : i32, i32
  }
  func.func @transform_6(%arg0: i32) -> (i32, i32) {
    %c0_i32 = arith.constant 0 : i32
    %c0_i32_0 = arith.constant 0 : i32
    %c0_i32_1 = arith.constant 0 : i32
    return %c0_i32, %c0_i32_0 : i32, i32
  }
  func.func @transform_7(%arg0: i32) -> (i32, i32) {
    %c0_i32 = arith.constant 0 : i32
    %c0_i32_0 = arith.constant 0 : i32
    %c0_i32_1 = arith.constant 0 : i32
    return %c0_i32, %c0_i32_0 : i32, i32
  }
  func.func @transform_8(%arg0: i32) -> (i32, i32) {
    %c0_i32 = arith.constant 0 : i32
    %c0_i32_0 = arith.constant 0 : i32
    %c0_i32_1 = arith.constant 0 : i32
    return %c0_i32, %c0_i32_0 : i32, i32
  }
  func.func @transform_9(%arg0: i32) -> (i32, i32) {
    %c0_i32 = arith.constant 0 : i32
    %c0_i32_0 = arith.constant 0 : i32
    %c0_i32_1 = arith.constant 0 : i32
    return %c0_i32, %c0_i32_0 : i32, i32
  }
}

</mosaic_0001>

<bundles_post_ra>
// kernel: generator_forward.1
= control target key start
LH: loop header
LB: loop body
LE: loop exit
PB: predicated region body
PF: predicated region fallthrough
CT: control target
= control target key end

     0   :  { %vm51_vm0 = vcmask 261120   ;;  %s2113_s23 = smov 32   ;;  %v2114_v23 = vmov 0.0   ;;  %v207_v43 = vlaneseq  ;;  %v2115_v45 = vmov -10000.0   ;;  %s2593_s4 = inlined_call_operand.vmem [shape: f32[32,128], index: 4, kind: input, shape index: {}]   ;;  %s2594_s0 = inlined_call_operand.vmem [shape: f32[64,32], index: 0, kind: input, shape index: {}]   ;;  %s2595_s5 = inlined_call_operand.vmem [shape: f32[1,128], index: 5, kind: input, shape index: {}]   ;;  %s2596_s6 = inlined_call_operand.vmem [shape: f32[32,256], index: 6, kind: input, shape index: {}]   ;;  %s2597_s8 = inlined_call_operand.vmem [shape: f32[8,8], index: 8, kind: input, shape index: {}]   ;;  %s2598_s1 = inlined_call_operand.vmem [shape: f32[64,1], index: 1, kind: input, shape index: {}]   ;;  %s2599_s7 = inlined_call_operand.vmem [shape: f32[1,8], index: 7, kind: input, shape index: {}]   ;;  %s2600_s2 = inlined_call_operand.vmem [shape: f32[64,8], index: 2, kind: input, shape index: {}]   ;;  %s2601_s3 = inlined_call_operand.vmem [shape: f32[8,1], index: 3, kind: input, shape index: {}]   ;;  %s2602_s9 = inlined_call_operand.vmem [shape: f32[8,128], index: 9, kind: output, shape index: {}]  }
   0x1   :  { %v43_v0 = vld [vmem:[%s2593_s4 + $0x18] sm:$0xff]  ;;  %v42_v1 = vld [vmem:[%s2593_s4 + $0x10] sm:$0xff]  ;;  %v32_v2 = vld [vmem:[%s2594_s0] sm:$0xff]  ;;  %305 = vmatprep.mubr.f32.mxu1 %v2114_v23  ;;  %vm325_vm2 = vcmask 64512   ;;  %vm2116_vm3 = vmmov 0  }
   0x2   :  { %1944 = vmatprep.subr.mxu0 %v43_v0  ;;  %v41_v3 = vld [vmem:[%s2593_s4 + $0x8] sm:$0xff]  ;;  %1952 = vmatprep.mubr.msk.f32.mxu0 %vm51_vm0, %v32_v2  ;;  %v40_v4 = vld [vmem:[%s2593_s4] sm:$0xff]  ;;  %s2112_s4 = smov 64   ;;  %v2199_v20 = vld [vmem:[%s2596_s6 + $0x38] sm:$0xff]  ;;  %v208_v44 = vand.u32 127, %v207_v43 }
   0x3   :  { %1945 = vmatpush3.msra.mxu0 %v43_v0  ;;  %v33_v5 = vld [vmem:[%s2594_s0 + $0x8] sm:$0xff]  ;;  %v2191_v7 = vld [vmem:[%s2595_s5] ss:$0 sm:$0xff]  ;;  %v2204_v21 = vld [vmem:[%s2596_s6 + $0x30] sm:$0xff]  ;;  %265 = vmatprep.subr.mxu1 %v2199_v20 }
   0x4   :  { %1946 = vmatprep.subr.mxu0 %v42_v1  ;;  %v2209_v22 = vld [vmem:[%s2596_s6 + $0x28] sm:$0xff]  ;;  %v2217_v24 = vld [vmem:[%s2596_s6 + $0x20] sm:$0xff]  ;;  %266 = vmatpush1.msra.mxu1 %v2204_v21  ;;  %v2223_v25 = vld [vmem:[%s2596_s6 + $0x18] sm:$0xff]  ;;  %vm209_vm1 = vcmp.eq.s32.totalorder %v208_v44, 1 }
   0x5   :  { %1947 = vmatpush3.msra.mxu0 %v42_v1  ;;  %267 = vmatprep.subr.mxu1 %v2209_v22  ;;  %v2229_v26 = vld [vmem:[%s2596_s6 + $0x10] sm:$0xff]  ;;  %v2235_v27 = vld [vmem:[%s2596_s6 + $0x8] sm:$0xff]  ;;  %v2241_v28 = vld [vmem:[%s2596_s6] sm:$0xff]  ;;  %v2253_v46 = vsel %vm209_vm1, 0.0, %v2115_v45 }
   0x6   :  { %1948 = vmatprep.subr.mxu0 %v41_v3  ;;  %268 = vmatpush1.msra.mxu1 %v2217_v24  ;;  %v326_v47 = vsel %vm325_vm2, %v2253_v46, -inf  ;;  %v2260_v48 = vld [vmem:[%s2597_s8] sm:$0xff]  ;;  %v34_v52 = vld [vmem:[%s2594_s0 + $0x10] sm:$0xff]  ;;  %v35_v53 = vld [vmem:[%s2594_s0 + $0x18] sm:$0xff] }
   0x7   :  { %1949 = vmatpush3.msra.mxu0 %v41_v3  ;;  %269 = vmatprep.subr.mxu1 %v2223_v25 }
   0x8   :  { %1950 = vmatprep.subr.mxu0 %v40_v4  ;;  %270 = vmatpush1.msra.mxu1 %v2229_v26 }
   0x9   :  { %1951 = vmatpush3.msra.mxu0 %v40_v4  ;;  %271 = vmatprep.subr.mxu1 %v2235_v27 }
   0xa   :  { %1953 = vmatmul.mubr.msk.f32.vlgmr.msra.gmra.mxu0 %vm51_vm0, %v33_v5  ;;  %1969 = vmatprep.subr.mxu0 %v2114_v23 }
   0xb   :  { %272 = vmatpush1.msra.mxu1 %v2241_v28  ;;  %1970 = vmatpush3.msra.mxu0 %v2260_v48 }
   0xc   :  { %1964 = vmatprep.subr.mxu1 %v2114_v23  ;;  %1974 = vmatprep.subr.mxu0 %v2114_v23 }
   0xd   :  { %1955 = vmatprep.mubr.msk.f32.mxu0 %vm51_vm0, %v34_v52 }
   0xe   :  { %1956 = vmatmul.mubr.msk.f32.gmra.mxu0 %vm51_vm0, %v35_v53 }
  0xca   :  { %v1954_v6 = vpop.f32.mrf.mxu0 }
  0xcb   :  { %v148_v33 = vadd.f32 %v1954_v6, %v2191_v7 }
  0xcc   :  { %v142_v8 = vpop.f32.mrf.mxu0 }
  0xcd   :  { %v143_v9 = vadd.f32 %v2191_v7, %v142_v8 }
  0xce   :  { %v2302_v1 = vpop.f32.mrf.mxu0 }
  0xcf   :  { %2012 = vtanh.f32 %v143_v9  ;;  %v1891_v11 = vmul.f32 -1.442695, %v143_v9 }
  0xd0   :  { %v152_v2 = vpop.f32.mrf.mxu0 }
  0xd1   :  { %2014 = vpow2.f32 %v1891_v11  ;;  %v153_v3 = vadd.f32 %v2191_v7, %v152_v2 }
  0xdc   :  { %v2013_v10 = vpop.eup %2012 }
  0xdd   :  { %221 = vrot.lane.b32.xlu0 %v2013_v10, %s2112_s4 }
  0xde   :  { %v2015_v12 = vpop.eup %2014 }
  0xdf   :  { %v215_v13 = vadd.f32 1.0, %v2015_v12 }
  0xe1   :  { %2016 = vrcp.f32 %v215_v13 }
  0xee   :  { %v2017_v14 = vpop.eup %2016 }
  0xef   :  { %v219_v17 = vmul.f32 0.0, %v2017_v14 }
 0x14f   :  { %v222_v15 = vpop.permute.xlu0 %221 }
 0x150   :  { %v224_v16 = vmul.f32 %v2017_v14, %v222_v15 }
 0x152   :  { %226 = vrot.lane.b32.xlu0 %v224_v16, %s2113_s23 }
 0x1c4   :  { %v227_v18 = vpop.permute.xlu0 %226 }
 0x1c5   :  { %v229_v19 = vadd.f32 %v227_v18, %v219_v17  ;;  %v2117_v17 = vmov 0  }
 0x1c6   :  { %2010 = vset.pattern.permute.xlu0 %v2117_v17  ;;  %2011 = vset.pattern.permute.xlu1 %v2117_v17 }
 0x1c7   :  { %2018 = vtanh.f32 %v229_v19 }
 0x1d4   :  { %v2019_v29 = vpop.eup %2018 }
 0x1d5   :  { %232 = vrot.lane.b32.xlu1 %v2019_v29, %s2112_s4 }
 0x247   :  { %v233_v30 = vpop.permute.xlu1 %232 }
 0x248   :  { %v235_v31 = vmul.f32 %v2017_v14, %v233_v30  ;;  %v181_v30 = vld [vmem:[%s2598_s1] sm:$0xff] }
 0x24a   :  { %237 = vrot.lane.b32.xlu1 %v235_v31, %s2113_s23  ;;  %v410_v31 = vsub.f32 1.0, %v181_v30 }
 0x2bc   :  { %v238_v32 = vpop.permute.xlu1 %237 }
 0x2bd   :  { %1892 = vmatmul.mubr.msk.f32.vlgmr.msra.gmra.mxu1 %vm51_vm0, %v238_v32 }
 0x2be   :  { %1966 = vmatprep.mubr.msk.f32.mxu1 %vm2116_vm3, %v2114_v23  ;;  %1965 = vmatpush3.msra.mxu1 %v2260_v48 }
 0x2bf   :  { %477 = vmatprep.subr.mxu1 %v2199_v20 }
 0x37d   :  { %v307_v34 = vpop.f32.mrf.mxu1 }
 0x37e   :  { %v423_v35 = vadd.f32 %v307_v34, %v148_v33 }
 0x37f   :  { %v309_v62 = vpop.f32.mrf.mxu1 }
 0x380   :  { %2020 = vtanh.f32 %v423_v35  ;;  %v1895_v37 = vmul.f32 -1.442695, %v423_v35  ;;  %v2323_v35 = vld [vmem:[%s2599_s7] ss:$0 sm:$0xff] }
 0x382   :  { %2022 = vpow2.f32 %v1895_v37  ;;  %v318_v37 = vadd.f32 %v2323_v35, %v309_v62 }
 0x38d   :  { %v2021_v36 = vpop.eup %2020 }
 0x38e   :  { %433 = vrot.lane.b32.xlu0 %v2021_v36, %s2112_s4 }
 0x38f   :  { %v2023_v38 = vpop.eup %2022 }
 0x390   :  { %v427_v39 = vadd.f32 1.0, %v2023_v38 }
 0x392   :  { %2024 = vrcp.f32 %v427_v39 }
 0x39f   :  { %v2025_v40 = vpop.eup %2024 }
 0x3a0   :  { %v431_v49 = vmul.f32 %v2025_v40, %v229_v19 }
 0x400   :  { %v434_v41 = vpop.permute.xlu0 %433 }
 0x401   :  { %v436_v42 = vmul.f32 %v2025_v40, %v434_v41 }
 0x403   :  { %438 = vrot.lane.b32.xlu1 %v436_v42, %s2113_s23 }
 0x427   :  { %327 = vmax.xlane.f32.xlu1 %v326_v47 }
 0x475   :  { %v439_v50 = vpop.permute.xlu1 %438 }
 0x476   :  { %v441_v51 = vadd.f32 %v439_v50, %v431_v49  ;;  %v36_v49 = vld [vmem:[%s2594_s0 + $0x20] sm:$0xff]  ;;  %v37_v50 = vld [vmem:[%s2594_s0 + $0x28] sm:$0xff] }
 0x477   :  { %1958 = vmatprep.mubr.msk.f32.mxu0 %vm51_vm0, %v36_v49 }
 0x478   :  { %2026 = vtanh.f32 %v441_v51  ;;  %1959 = vmatmul.mubr.msk.f32.gmra.mxu0 %vm51_vm0, %v37_v50 }
 0x485   :  { %v2027_v54 = vpop.eup %2026 }
 0x486   :  { %444 = vrot.lane.b32.xlu0 %v2027_v54, %s2112_s4 }
 0x4b0   :  { %v2277_v55 = vpop.xlane.xlu1 %327 }
 0x4b1   :  { %v329_v56 = vsub.f32 %v2253_v46, %v2277_v55 }
 0x4b3   :  { %v330_v57 = vmul.f32 1.442695, %v329_v56 }
 0x4b5   :  { %2028 = vpow2.f32 %v330_v57  ;;  %v158_v57 = vadd.f32 %v2302_v1, %v2191_v7  ;;  %v182_v1 = vld [vmem:[%s2598_s1 + $0x8] sm:$0xff] }
 0x4c2   :  { %v2029_v58 = vpop.eup %2028 }
 0x4c3   :  { %1967 = vmatmul.mubr.msk.f32.vlgmr.msra.gmra.mxu1 %vm325_vm2, %v2029_v58 }
 0x4c4   :  { %478 = vmatpush1.msra.mxu1 %v2204_v21  ;;  %517 = vmatprep.mubr.f32.mxu1 %v2114_v23 }
 0x4c5   :  { %479 = vmatprep.subr.mxu1 %v2209_v22 }
 0x4c6   :  { %480 = vmatpush1.msra.mxu1 %v2217_v24 }
 0x4c7   :  { %481 = vmatprep.subr.mxu1 %v2223_v25 }
 0x4c8   :  { %482 = vmatpush1.msra.mxu1 %v2229_v26 }
 0x4c9   :  { %483 = vmatprep.subr.mxu1 %v2235_v27 }
 0x4ca   :  { %484 = vmatpush1.msra.mxu1 %v2241_v28 }
 0x4cb   :  { %682 = vmatprep.subr.mxu1 %v2199_v20 }
 0x4f8   :  { %v445_v59 = vpop.permute.xlu0 %444 }
 0x4f9   :  { %v447_v60 = vmul.f32 %v2025_v40, %v445_v59 }
 0x4fb   :  { %449 = vrot.lane.b32.xlu0 %v447_v60, %s2113_s23 }
 0x56d   :  { %v450_v61 = vpop.permute.xlu0 %449 }
 0x56e   :  { %1896 = vmatmul.mubr.msk.f32.vlgmr.msra.gmra.mxu1 %vm51_vm0, %v450_v61 }
 0x56f   :  { %683 = vmatpush1.msra.mxu1 %v2204_v21  ;;  %722 = vmatprep.mubr.f32.mxu1 %v2114_v23 }
 0x570   :  { %684 = vmatprep.subr.mxu1 %v2209_v22 }
 0x571   :  { %685 = vmatpush1.msra.mxu1 %v2217_v24 }
 0x572   :  { %686 = vmatprep.subr.mxu1 %v2223_v25 }
 0x573   :  { %687 = vmatpush1.msra.mxu1 %v2229_v26 }
 0x574   :  { %688 = vmatprep.subr.mxu1 %v2235_v27 }
 0x575   :  { %689 = vmatpush1.msra.mxu1 %v2241_v28 }
 0x576   :  { %1979 = vmatprep.subr.mxu1 %v2114_v23 }
 0x583   :  { %v401_v63 = vpop.f32.mrf.mxu1 }
 0x584   :  { %v402_v32 = vadd.f32 1e-30, %v401_v63 }
 0x585   :  { %v1968_v0 = vpop.f32.mrf.mxu1 }
 0x62e   :  { %v519_v4 = vpop.f32.mrf.mxu1 }
 0x62f   :  { %v628_v5 = vadd.f32 %v519_v4, %v153_v3  ;;  %v615_v4 = vsub.f32 1.0, %v182_v1 }
 0x630   :  { %v521_v56 = vpop.f32.mrf.mxu1 }
 0x631   :  { %2030 = vtanh.f32 %v628_v5  ;;  %v1898_v8 = vmul.f32 -1.442695, %v628_v5  ;;  %v2366_v5 = vpop.f32.mrf.mxu0 }
 0x633   :  { %2032 = vpow2.f32 %v1898_v8 }
 0x63e   :  { %v2031_v6 = vpop.eup %2030 }
 0x63f   :  { %638 = vrot.lane.b32.xlu0 %v2031_v6, %s2112_s4  ;;  %v162_v6 = vpop.f32.mrf.mxu0 }
 0x640   :  { %v2033_v9 = vpop.eup %2032 }
 0x641   :  { %v632_v10 = vadd.f32 1.0, %v2033_v9 }
 0x643   :  { %2034 = vrcp.f32 %v632_v10 }
 0x650   :  { %v2035_v11 = vpop.eup %2034 }
 0x651   :  { %v636_v14 = vmul.f32 %v2035_v11, %v441_v51  ;;  %v38_v51 = vld [vmem:[%s2594_s0 + $0x30] sm:$0xff] }
 0x652   :  { %1961 = vmatprep.mubr.msk.f32.mxu0 %vm51_vm0, %v38_v51  ;;  %v163_v51 = vadd.f32 %v2191_v7, %v162_v6 }
 0x6b1   :  { %v639_v12 = vpop.permute.xlu0 %638 }
 0x6b2   :  { %v641_v13 = vmul.f32 %v2035_v11, %v639_v12 }
 0x6b4   :  { %643 = vrot.lane.b32.xlu0 %v641_v13, %s2113_s23 }
 0x726   :  { %v644_v15 = vpop.permute.xlu0 %643 }
 0x727   :  { %v2307_v16 = vadd.f32 %v644_v15, %v636_v14 }
 0x729   :  { %2036 = vtanh.f32 %v2307_v16 }
 0x72a   :  { %2038 = vlog2.f32 %v402_v32 }
 0x736   :  { %v2037_v18 = vpop.eup %2036 }
 0x737   :  { %649 = vrot.lane.b32.xlu0 %v2037_v18, %s2112_s4  ;;  %v2039_v34 = vpop.eup %2038 }
 0x738   :  { %v406_v36 = vmul.f32 0.6931472, %v2039_v34 }
 0x73a   :  { %v407_v39 = vadd.f32 %v406_v36, %v2277_v55 }
 0x7a9   :  { %v650_v19 = vpop.permute.xlu0 %649 }
 0x7aa   :  { %v652_v29 = vmul.f32 %v2035_v11, %v650_v19  ;;  %v524_v19 = vadd.f32 %v2323_v35, %v521_v56 }
 0x7ac   :  { %654 = vrot.lane.b32.xlu0 %v652_v29, %s2113_s23 }
 0x7b0   :  { %321 = vperm.xlu0 %2010, %v181_v30  }
 0x7b4   :  { %413 = vperm.xlu0 %2010, %v410_v31  }
 0x81e   :  { %v655_v33 = vpop.permute.xlu0 %654 }
 0x81f   :  { %1899 = vmatmul.mubr.msk.f32.vlgmr.msra.gmra.mxu1 %vm51_vm0, %v655_v33 }
 0x820   :  { %1980 = vmatpush3.msra.mxu1 %v2260_v48  ;;  %1981 = vmatprep.mubr.msk.f32.mxu1 %vm2116_vm3, %v2114_v23 }
 0x821   :  { %1092 = vmatprep.subr.mxu1 %v2199_v20 }
 0x82b   :  { %v322_v38 = vpop.permute.xlu0 %321 }
 0x82c   :  { %v2327_v40 = vmul.f32 %v322_v38, %v318_v37 }
 0x82e   :  { %v408_v41 = vadd.f32 %v407_v39, %v2327_v40 }
 0x82f   :  { %v414_v42 = vpop.permute.xlu0 %413 }
 0x830   :  { %v409_v43 = vmul.f32 %v408_v41, %v322_v38  ;;  %v416_v44 = vmul.f32 %v414_v42, %v2253_v46  ;;  %v39_v46 = vld [vmem:[%s2594_s0 + $0x38] sm:$0xff] }
 0x831   :  { %1962 = vmatmul.mubr.msk.f32.gmra.mxu0 %vm51_vm0, %v39_v46 }
 0x832   :  { %v2331_v45 = vadd.f32 %v416_v44, %v409_v43  ;;  %1971 = vmatprep.mubr.msk.f32.mxu0 %vm2116_vm3, %v2114_v23 }
 0x834   :  { %v531_v47 = vsel %vm325_vm2, %v2331_v45, -inf }
 0x835   :  { %532 = vmax.xlane.f32.xlu0 %v531_v47 }
 0x8be   :  { %v533_v52 = vpop.xlane.xlu0 %532 }
 0x8bf   :  { %v534_v53 = vsub.f32 %v2331_v45, %v533_v52 }
 0x8c1   :  { %v535_v54 = vmul.f32 1.442695, %v534_v53 }
 0x8c3   :  { %2040 = vpow2.f32 %v535_v54 }
 0x8d0   :  { %v2041_v55 = vpop.eup %2040 }
 0x8d1   :  { %1972 = vmatmul.mubr.msk.f32.vlgmr.msra.gmra.mxu0 %vm325_vm2, %v2041_v55 }
 0x8d2   :  { %1975 = vmatpush3.msra.mxu0 %v2260_v48  ;;  %1976 = vmatprep.mubr.msk.f32.mxu0 %vm2116_vm3, %v2114_v23 }
 0x8d3   :  { %887 = vmatprep.subr.mxu0 %v2199_v20 }
 0x8df   :  { %v724_v58 = vpop.f32.mrf.mxu1 }
 0x8e0   :  { %v833_v59 = vadd.f32 %v724_v58, %v158_v57 }
 0x8e2   :  { %2042 = vtanh.f32 %v833_v59  ;;  %v1901_v61 = vmul.f32 -1.442695, %v833_v59 }
 0x8e4   :  { %2044 = vpow2.f32 %v1901_v61 }
 0x8ef   :  { %v2043_v60 = vpop.eup %2042 }
 0x8f0   :  { %843 = vrot.lane.b32.xlu1 %v2043_v60, %s2112_s4  ;;  %v183_v60 = vld [vmem:[%s2598_s1 + $0x10] sm:$0xff] }
 0x8f1   :  { %v2045_v62 = vpop.eup %2044  ;;  %v2368_v8 = vpop.f32.mrf.mxu0  ;;  %v820_v61 = vsub.f32 1.0, %v183_v60 }
 0x8f2   :  { %v837_v63 = vadd.f32 1.0, %v2045_v62 }
 0x8f3   :  { %v2370_v9 = vpop.f32.mrf.mxu0 }
 0x8f4   :  { %2046 = vrcp.f32 %v837_v63 }
 0x901   :  { %v2047_v0 = vpop.eup %2046 }
 0x902   :  { %v841_v13 = vmul.f32 %v2047_v0, %v2307_v16 }
 0x962   :  { %v844_v2 = vpop.permute.xlu1 %843 }
 0x963   :  { %v846_v3 = vmul.f32 %v2047_v0, %v844_v2 }
 0x965   :  { %848 = vrot.lane.b32.xlu1 %v846_v3, %s2113_s23 }
 0x969   :  { %527 = vperm.xlu1 %2011, %v182_v1  }
 0x96d   :  { %618 = vperm.xlu1 %2011, %v615_v4   ;;  %v726_v4 = vpop.f32.mrf.mxu1 }
 0x991   :  { %v606_v10 = vpop.f32.mrf.mxu0 }
 0x992   :  { %v607_v12 = vadd.f32 1e-30, %v606_v10  ;;  %v729_v10 = vadd.f32 %v2323_v35, %v726_v4 }
 0x993   :  { %v1973_v11 = vpop.f32.mrf.mxu0 }
 0x994   :  { %2048 = vlog2.f32 %v607_v12 }
 0x9a1   :  { %v2049_v17 = vpop.eup %2048 }
 0x9a2   :  { %v611_v18 = vmul.f32 0.6931472, %v2049_v17 }
 0x9a4   :  { %v612_v31 = vadd.f32 %v611_v18, %v533_v52 }
 0x9d7   :  { %v849_v14 = vpop.permute.xlu1 %848 }
 0x9d8   :  { %v851_v15 = vadd.f32 %v849_v14, %v841_v13 }
 0x9da   :  { %2050 = vtanh.f32 %v851_v15 }
 0x9e4   :  { %v528_v29 = vpop.permute.xlu1 %527 }
 0x9e5   :  { %v2374_v30 = vmul.f32 %v528_v29, %v524_v19 }
 0x9e7   :  { %v2051_v32 = vpop.eup %2050  ;;  %v613_v33 = vadd.f32 %v612_v31, %v2374_v30 }
 0x9e8   :  { %v619_v34 = vpop.permute.xlu1 %618  ;;  %854 = vrot.lane.b32.xlu1 %v2051_v32, %s2112_s4 }
 0x9e9   :  { %v614_v36 = vmul.f32 %v613_v33, %v528_v29  ;;  %v621_v16 = vmul.f32 %v619_v34, %v2331_v45 }
 0x9eb   :  { %v2379_v37 = vadd.f32 %v621_v16, %v614_v36 }
 0x9ed   :  { %v736_v38 = vsel %vm325_vm2, %v2379_v37, -inf }
 0x9ee   :  { %737 = vmax.xlane.f32.xlu0 %v736_v38 }
 0xa5a   :  { %v855_v39 = vpop.permute.xlu1 %854 }
 0xa5b   :  { %v857_v41 = vmul.f32 %v2047_v0, %v855_v39 }
 0xa5d   :  { %859 = vrot.lane.b32.xlu1 %v857_v41, %s2113_s23  ;;  %v168_v41 = vadd.f32 %v2366_v5, %v2191_v7  ;;  %v184_v5 = vld [vmem:[%s2598_s1 + $0x18] sm:$0xff] }
 0xa77   :  { %v738_v42 = vpop.xlane.xlu0 %737 }
 0xa78   :  { %v739_v43 = vsub.f32 %v2379_v37, %v738_v42 }
 0xa7a   :  { %v740_v44 = vmul.f32 1.442695, %v739_v43 }
 0xa7c   :  { %2052 = vpow2.f32 %v740_v44 }
 0xa89   :  { %v2053_v47 = vpop.eup %2052 }
 0xa8a   :  { %1977 = vmatmul.mubr.msk.f32.vlgmr.msra.gmra.mxu0 %vm325_vm2, %v2053_v47 }
 0xa8b   :  { %888 = vmatpush1.msra.mxu0 %v2204_v21  ;;  %927 = vmatprep.mubr.f32.mxu0 %v2114_v23 }
 0xa8c   :  { %889 = vmatprep.subr.mxu0 %v2209_v22 }
 0xa8d   :  { %890 = vmatpush1.msra.mxu0 %v2217_v24 }
 0xa8e   :  { %891 = vmatprep.subr.mxu0 %v2223_v25 }
 0xa8f   :  { %892 = vmatpush1.msra.mxu0 %v2229_v26 }
 0xa90   :  { %893 = vmatprep.subr.mxu0 %v2235_v27 }
 0xa91   :  { %894 = vmatpush1.msra.mxu0 %v2241_v28 }
 0xa92   :  { %1984 = vmatprep.subr.mxu0 %v2114_v23 }
 0xacf   :  { %v860_v45 = vpop.permute.xlu1 %859 }
 0xad0   :  { %1902 = vmatmul.mubr.msk.f32.vlgmr.msra.gmra.mxu0 %vm51_vm0, %v860_v45 }
 0xad1   :  { %1985 = vmatpush3.msra.mxu0 %v2260_v48  ;;  %1986 = vmatprep.mubr.msk.f32.mxu0 %vm2116_vm3, %v2114_v23 }
 0xad2   :  { %1297 = vmatprep.subr.mxu0 %v2199_v20 }
 0xb4a   :  { %v811_v49 = vpop.f32.mrf.mxu0 }
 0xb4b   :  { %v812_v2 = vadd.f32 1e-30, %v811_v49 }
 0xb4c   :  { %v1978_v50 = vpop.f32.mrf.mxu0 }
 0xb90   :  { %v929_v46 = vpop.f32.mrf.mxu0 }
 0xb91   :  { %v1038_v52 = vadd.f32 %v929_v46, %v163_v51 }
 0xb93   :  { %2054 = vtanh.f32 %v1038_v52  ;;  %v1904_v54 = vmul.f32 -1.442695, %v1038_v52  ;;  %v1025_v52 = vsub.f32 1.0, %v184_v5 }
 0xb95   :  { %2056 = vpow2.f32 %v1904_v54 }
 0xba0   :  { %v2055_v53 = vpop.eup %2054 }
 0xba1   :  { %1048 = vrot.lane.b32.xlu0 %v2055_v53, %s2112_s4 }
 0xba2   :  { %v2057_v55 = vpop.eup %2056 }
 0xba3   :  { %v1042_v56 = vadd.f32 1.0, %v2057_v55 }
 0xba5   :  { %2058 = vrcp.f32 %v1042_v56 }
 0xbb2   :  { %v2059_v57 = vpop.eup %2058 }
 0xbb3   :  { %v1046_v62 = vmul.f32 %v2059_v57, %v851_v15 }
 0xc13   :  { %v1049_v58 = vpop.permute.xlu0 %1048 }
 0xc14   :  { %v1051_v59 = vmul.f32 %v2059_v57, %v1049_v58 }
 0xc16   :  { %1053 = vrot.lane.b32.xlu1 %v1051_v59, %s2113_s23  ;;  %v931_v59 = vpop.f32.mrf.mxu0 }
 0xc1a   :  { %732 = vperm.xlu1 %2011, %v183_v60  }
 0xc1e   :  { %823 = vperm.xlu1 %2011, %v820_v61   ;;  %v934_v61 = vadd.f32 %v2323_v35, %v931_v59 }
 0xc88   :  { %v1054_v63 = vpop.permute.xlu1 %1053 }
 0xc89   :  { %v2406_v0 = vadd.f32 %v1054_v63, %v1046_v62 }
 0xc8b   :  { %2060 = vtanh.f32 %v2406_v0 }
 0xc8c   :  { %2062 = vlog2.f32 %v812_v2 }
 0xc95   :  { %v733_v6 = vpop.permute.xlu1 %732 }
 0xc96   :  { %v2411_v12 = vmul.f32 %v733_v6, %v729_v10 }
 0xc98   :  { %v2061_v3 = vpop.eup %2060 }
 0xc99   :  { %1059 = vrot.lane.b32.xlu1 %v2061_v3, %s2112_s4  ;;  %v2063_v1 = vpop.eup %2062  ;;  %v824_v15 = vpop.permute.xlu1 %823 }
 0xc9a   :  { %v816_v11 = vmul.f32 0.6931472, %v2063_v1  ;;  %v826_v18 = vmul.f32 %v824_v15, %v2379_v37 }
 0xc9c   :  { %v817_v13 = vadd.f32 %v816_v11, %v738_v42 }
 0xc9e   :  { %v818_v14 = vadd.f32 %v817_v13, %v2411_v12 }
 0xca0   :  { %v819_v17 = vmul.f32 %v818_v14, %v733_v6  ;;  %v185_v14 = vld [vmem:[%s2598_s1 + $0x20] sm:$0xff] }
 0xca1   :  { %v1230_v15 = vsub.f32 1.0, %v185_v14 }
 0xca2   :  { %v2415_v19 = vadd.f32 %v826_v18, %v819_v17 }
 0xca4   :  { %v941_v29 = vsel %vm325_vm2, %v2415_v19, -inf }
 0xcbd   :  { %942 = vmax.xlane.f32.xlu1 %v941_v29 }
 0xd0b   :  { %v1060_v31 = vpop.permute.xlu1 %1059 }
 0xd0c   :  { %v1062_v32 = vmul.f32 %v2059_v57, %v1060_v31 }
 0xd0e   :  { %1064 = vrot.lane.b32.xlu0 %v1062_v32, %s2113_s23 }
 0xd46   :  { %v943_v33 = vpop.xlane.xlu1 %942 }
 0xd47   :  { %v944_v34 = vsub.f32 %v2415_v19, %v943_v33 }
 0xd49   :  { %v945_v36 = vmul.f32 1.442695, %v944_v34 }
 0xd4b   :  { %2064 = vpow2.f32 %v945_v36 }
 0xd58   :  { %v2065_v16 = vpop.eup %2064 }
 0xd59   :  { %1982 = vmatmul.mubr.msk.f32.vlgmr.msra.gmra.mxu1 %vm325_vm2, %v2065_v16 }
 0xd5a   :  { %1093 = vmatpush1.msra.mxu1 %v2204_v21  ;;  %1132 = vmatprep.mubr.f32.mxu1 %v2114_v23 }
 0xd5b   :  { %1094 = vmatprep.subr.mxu1 %v2209_v22 }
 0xd5c   :  { %1095 = vmatpush1.msra.mxu1 %v2217_v24 }
 0xd5d   :  { %1096 = vmatprep.subr.mxu1 %v2223_v25 }
 0xd5e   :  { %1097 = vmatpush1.msra.mxu1 %v2229_v26 }
 0xd5f   :  { %1098 = vmatprep.subr.mxu1 %v2235_v27 }
 0xd60   :  { %1099 = vmatpush1.msra.mxu1 %v2241_v28 }
 0xd61   :  { %1989 = vmatprep.subr.mxu1 %v2114_v23 }
 0xd80   :  { %v1065_v37 = vpop.permute.xlu0 %1064 }
 0xd81   :  { %1905 = vmatmul.mubr.msk.f32.vlgmr.msra.gmra.mxu1 %vm51_vm0, %v1065_v37 }
 0xd82   :  { %1990 = vmatpush3.msra.mxu1 %v2260_v48  ;;  %1991 = vmatprep.mubr.msk.f32.mxu1 %vm2116_vm3, %v2114_v23 }
 0xd83   :  { %1502 = vmatprep.subr.mxu1 %v2199_v20 }
 0xe19   :  { %v1016_v38 = vpop.f32.mrf.mxu1 }
 0xe1a   :  { %v1017_v56 = vadd.f32 1e-30, %v1016_v38 }
 0xe1b   :  { %v1983_v39 = vpop.f32.mrf.mxu1 }
 0xe41   :  { %v1134_v42 = vpop.f32.mrf.mxu1 }
 0xe42   :  { %v1243_v43 = vadd.f32 %v1134_v42, %v168_v41 }
 0xe43   :  { %v1136_v36 = vpop.f32.mrf.mxu1 }
 0xe44   :  { %2066 = vtanh.f32 %v1243_v43  ;;  %v1907_v47 = vmul.f32 -1.442695, %v1243_v43  ;;  %v1139_v38 = vadd.f32 %v2323_v35, %v1136_v36 }
 0xe46   :  { %2068 = vpow2.f32 %v1907_v47 }
 0xe51   :  { %v2067_v44 = vpop.eup %2066 }
 0xe52   :  { %1253 = vrot.lane.b32.xlu0 %v2067_v44, %s2112_s4 }
 0xe53   :  { %v2069_v45 = vpop.eup %2068 }
 0xe54   :  { %v1247_v49 = vadd.f32 1.0, %v2069_v45 }
 0xe56   :  { %2070 = vrcp.f32 %v1247_v49 }
 0xe63   :  { %v2071_v50 = vpop.eup %2070 }
 0xe64   :  { %v1251_v53 = vmul.f32 %v2071_v50, %v2406_v0 }
 0xec4   :  { %v1254_v51 = vpop.permute.xlu0 %1253 }
 0xec5   :  { %v1256_v46 = vmul.f32 %v2071_v50, %v1254_v51 }
 0xec7   :  { %1258 = vrot.lane.b32.xlu0 %v1256_v46, %s2113_s23 }
 0xecb   :  { %937 = vperm.xlu0 %2010, %v184_v5  }
 0xecf   :  { %1028 = vperm.xlu0 %2010, %v1025_v52  }
 0xf39   :  { %v1259_v54 = vpop.permute.xlu0 %1258 }
 0xf3a   :  { %v2444_v55 = vadd.f32 %v1259_v54, %v1251_v53 }
 0xf3c   :  { %2072 = vtanh.f32 %v2444_v55 }
 0xf3d   :  { %2074 = vlog2.f32 %v1017_v56 }
 0xf46   :  { %v938_v60 = vpop.permute.xlu0 %937 }
 0xf47   :  { %v2449_v63 = vmul.f32 %v938_v60, %v934_v61 }
 0xf49   :  { %v2073_v57 = vpop.eup %2072 }
 0xf4a   :  { %1264 = vrot.lane.b32.xlu0 %v2073_v57, %s2112_s4  ;;  %v2075_v58 = vpop.eup %2074  ;;  %v1029_v3 = vpop.permute.xlu0 %1028 }
 0xf4b   :  { %v1021_v62 = vmul.f32 0.6931472, %v2075_v58  ;;  %v1031_v4 = vmul.f32 %v1029_v3, %v2415_v19 }
 0xf4d   :  { %v1022_v2 = vadd.f32 %v1021_v62, %v943_v33 }
 0xf4f   :  { %v1023_v0 = vadd.f32 %v1022_v2, %v2449_v63 }
 0xf51   :  { %v1024_v1 = vmul.f32 %v1023_v0, %v938_v60 }
 0xf53   :  { %v1032_v6 = vadd.f32 %v1031_v4, %v1024_v1 }
 0xf55   :  { %v1146_v10 = vsel %vm325_vm2, %v1032_v6, -inf }
 0xf69   :  { %1147 = vmax.xlane.f32.xlu0 %v1146_v10 }
 0xfbc   :  { %v1265_v11 = vpop.permute.xlu0 %1264 }
 0xfbd   :  { %v1267_v13 = vmul.f32 %v2071_v50, %v1265_v11  ;;  %v173_v50 = vadd.f32 %v2191_v7, %v2370_v9  ;;  %v186_v11 = vld [vmem:[%s2598_s1 + $0x28] sm:$0xff] }
 0xfbf   :  { %1269 = vrot.lane.b32.xlu1 %v1267_v13, %s2113_s23  ;;  %v1435_v13 = vsub.f32 1.0, %v186_v11 }
 0xfc3   :  { %1142 = vperm.xlu1 %2011, %v185_v14  }
 0xfc7   :  { %1233 = vperm.xlu1 %2011, %v1230_v15  }
 0xff2   :  { %v1148_v17 = vpop.xlane.xlu0 %1147 }
 0xff3   :  { %v1149_v18 = vsub.f32 %v1032_v6, %v1148_v17 }
 0xff5   :  { %v1150_v29 = vmul.f32 1.442695, %v1149_v18 }
 0xff7   :  { %2076 = vpow2.f32 %v1150_v29 }
0x1004   :  { %v2077_v19 = vpop.eup %2076 }
0x1005   :  { %1987 = vmatmul.mubr.msk.f32.vlgmr.msra.gmra.mxu0 %vm325_vm2, %v2077_v19 }
0x1006   :  { %1298 = vmatpush1.msra.mxu0 %v2204_v21  ;;  %1337 = vmatprep.mubr.f32.mxu0 %v2114_v23 }
0x1007   :  { %1299 = vmatprep.subr.mxu0 %v2209_v22 }
0x1008   :  { %1300 = vmatpush1.msra.mxu0 %v2217_v24 }
0x1009   :  { %1301 = vmatprep.subr.mxu0 %v2223_v25 }
0x100a   :  { %1302 = vmatpush1.msra.mxu0 %v2229_v26 }
0x100b   :  { %1303 = vmatprep.subr.mxu0 %v2235_v27 }
0x100c   :  { %1304 = vmatpush1.msra.mxu0 %v2241_v28 }
0x100d   :  { %1994 = vmatprep.subr.mxu0 %v2114_v23 }
0x1031   :  { %v1270_v31 = vpop.permute.xlu1 %1269 }
0x1032   :  { %1908 = vmatmul.mubr.msk.f32.vlgmr.msra.gmra.mxu0 %vm51_vm0, %v1270_v31 }
0x1033   :  { %1995 = vmatpush3.msra.mxu0 %v2260_v48  ;;  %1996 = vmatprep.mubr.msk.f32.mxu0 %vm2116_vm3, %v2114_v23 }
0x1034   :  { %1707 = vmatprep.subr.mxu0 %v2199_v20 }
0x103e   :  { %v1143_v16 = vpop.permute.xlu1 %1142 }
0x103f   :  { %v2474_v41 = vmul.f32 %v1143_v16, %v1139_v38 }
0x1042   :  { %v1234_v43 = vpop.permute.xlu1 %1233 }
0x1043   :  { %v1236_v47 = vmul.f32 %v1234_v43, %v1032_v6 }
0x10c5   :  { %v1221_v32 = vpop.f32.mrf.mxu0 }
0x10c6   :  { %v1222_v33 = vadd.f32 1e-30, %v1221_v32 }
0x10c7   :  { %v1988_v34 = vpop.f32.mrf.mxu0 }
0x10c8   :  { %2078 = vlog2.f32 %v1222_v33 }
0x10d5   :  { %v2079_v37 = vpop.eup %2078 }
0x10d6   :  { %v1226_v39 = vmul.f32 0.6931472, %v2079_v37 }
0x10d8   :  { %v1227_v42 = vadd.f32 %v1226_v39, %v1148_v17 }
0x10da   :  { %v1228_v44 = vadd.f32 %v1227_v42, %v2474_v41 }
0x10dc   :  { %v1229_v45 = vmul.f32 %v1228_v44, %v1143_v16  ;;  %v178_v44 = vadd.f32 %v2368_v8, %v2191_v7  ;;  %v187_v7 = vld [vmem:[%s2598_s1 + $0x30] sm:$0xff] }
0x10de   :  { %v2477_v49 = vadd.f32 %v1236_v47, %v1229_v45 }
0x10e0   :  { %v1351_v20 = vsel %vm325_vm2, %v2477_v49, -inf }
0x10e1   :  { %1352 = vmax.xlane.f32.xlu0 %v1351_v20 }
0x10f2   :  { %v1339_v51 = vpop.f32.mrf.mxu0 }
0x10f3   :  { %v1448_v46 = vadd.f32 %v1339_v51, %v173_v50 }
0x10f4   :  { %v1341_v17 = vpop.f32.mrf.mxu0 }
0x10f5   :  { %2080 = vtanh.f32 %v1448_v46  ;;  %v1910_v52 = vmul.f32 -1.442695, %v1448_v46  ;;  %v1344_v29 = vadd.f32 %v2323_v35, %v1341_v17 }
0x10f7   :  { %2082 = vpow2.f32 %v1910_v52 }
0x1102   :  { %v2081_v5 = vpop.eup %2080 }
0x1103   :  { %1458 = vrot.lane.b32.xlu1 %v2081_v5, %s2112_s4 }
0x1104   :  { %v2083_v53 = vpop.eup %2082 }
0x1105   :  { %v1452_v54 = vadd.f32 1.0, %v2083_v53 }
0x1107   :  { %2084 = vrcp.f32 %v1452_v54 }
0x1114   :  { %v2085_v59 = vpop.eup %2084 }
0x1115   :  { %v1456_v62 = vmul.f32 %v2085_v59, %v2444_v55 }
0x116a   :  { %v1353_v56 = vpop.xlane.xlu0 %1352 }
0x116b   :  { %v1354_v57 = vsub.f32 %v2477_v49, %v1353_v56 }
0x116d   :  { %v1355_v58 = vmul.f32 1.442695, %v1354_v57 }
0x116f   :  { %2086 = vpow2.f32 %v1355_v58 }
0x1175   :  { %v1459_v60 = vpop.permute.xlu1 %1458 }
0x1176   :  { %v1461_v61 = vmul.f32 %v2085_v59, %v1459_v60 }
0x1178   :  { %1463 = vrot.lane.b32.xlu0 %v1461_v61, %s2113_s23 }
0x117c   :  { %v2087_v9 = vpop.eup %2086 }
0x117d   :  { %1992 = vmatmul.mubr.msk.f32.vlgmr.msra.gmra.mxu1 %vm325_vm2, %v2087_v9 }
0x117e   :  { %1503 = vmatpush1.msra.mxu1 %v2204_v21  ;;  %1542 = vmatprep.mubr.f32.mxu1 %v2114_v23 }
0x117f   :  { %1504 = vmatprep.subr.mxu1 %v2209_v22 }
0x1180   :  { %1505 = vmatpush1.msra.mxu1 %v2217_v24 }
0x1181   :  { %1506 = vmatprep.subr.mxu1 %v2223_v25 }
0x1182   :  { %1507 = vmatpush1.msra.mxu1 %v2229_v26 }
0x1183   :  { %1508 = vmatprep.subr.mxu1 %v2235_v27 }
0x1184   :  { %1509 = vmatpush1.msra.mxu1 %v2241_v28 }
0x1185   :  { %1999 = vmatprep.subr.mxu1 %v2114_v23 }
0x11ea   :  { %v1464_v2 = vpop.permute.xlu0 %1463 }
0x11eb   :  { %v2497_v0 = vadd.f32 %v1464_v2, %v1456_v62 }
0x11ed   :  { %2088 = vtanh.f32 %v2497_v0 }
0x11fa   :  { %v2089_v3 = vpop.eup %2088 }
0x11fb   :  { %1469 = vrot.lane.b32.xlu1 %v2089_v3, %s2112_s4  ;;  %v188_v3 = vld [vmem:[%s2598_s1 + $0x38] sm:$0xff] }
0x123d   :  { %v1426_v1 = vpop.f32.mrf.mxu1 }
0x123e   :  { %v1427_v55 = vadd.f32 1e-30, %v1426_v1  ;;  %v1844_v1 = vsub.f32 1.0, %v188_v3 }
0x123f   :  { %v1993_v4 = vpop.f32.mrf.mxu1 }
0x1240   :  { %2090 = vlog2.f32 %v1427_v55  ;;  %v190_v4 = vld [vmem:[%s2600_s2 + $0x8] sm:$0xff] }
0x124d   :  { %v2091_v15 = vpop.eup %2090 }
0x124e   :  { %v1431_v18 = vmul.f32 0.6931472, %v2091_v15 }
0x1250   :  { %v1432_v31 = vadd.f32 %v1431_v18, %v1353_v56  ;;  %v191_v18 = vld [vmem:[%s2600_s2 + $0x10] sm:$0xff] }
0x126d   :  { %v1470_v6 = vpop.permute.xlu1 %1469 }
0x126e   :  { %v1472_v10 = vmul.f32 %v2085_v59, %v1470_v6  ;;  %v623_v6 = vmul.f32 %v2374_v30, %v190_v4  ;;  %v189_v30 = vld [vmem:[%s2600_s2] sm:$0xff] }
0x126f   :  { %v418_v17 = vmul.f32 %v2327_v40, %v189_v30  ;;  %v193_v40 = vld [vmem:[%s2600_s2 + $0x20] sm:$0xff] }
0x1270   :  { %1474 = vrot.lane.b32.xlu1 %v1472_v10, %s2113_s23  ;;  %v195_v10 = vld [vmem:[%s2600_s2 + $0x30] sm:$0xff]  ;;  %v1870_v30 = vld [vmem:[%s2601_s3] sm:$0xff] }
0x1274   :  { %1347 = vperm.xlu1 %2011, %v186_v11   ;;  %v624_v11 = vsel %vm325_vm2, %v623_v6, 0.0 }
0x1278   :  { %1438 = vperm.xlu1 %2011, %v1435_v13  }
0x12e2   :  { %v1475_v14 = vpop.permute.xlu1 %1474 }
0x12e3   :  { %1911 = vmatmul.mubr.msk.f32.vlgmr.msra.gmra.mxu1 %vm51_vm0, %v1475_v14 }
0x12e4   :  { %2000 = vmatpush3.msra.mxu1 %v2260_v48  ;;  %2001 = vmatprep.mubr.msk.f32.mxu1 %vm2116_vm3, %v2114_v23 }
0x12ef   :  { %v1348_v19 = vpop.permute.xlu1 %1347 }
0x12f0   :  { %v2510_v32 = vmul.f32 %v1348_v19, %v1344_v29  ;;  %v419_v29 = vsel %vm325_vm2, %v418_v17, 0.0 }
0x12f2   :  { %v1433_v33 = vadd.f32 %v1432_v31, %v2510_v32  ;;  %v192_v31 = vld [vmem:[%s2600_s2 + $0x18] sm:$0xff] }
0x12f3   :  { %v1439_v34 = vpop.permute.xlu1 %1438 }
0x12f4   :  { %v1434_v36 = vmul.f32 %v1433_v33, %v1348_v19  ;;  %v1441_v16 = vmul.f32 %v1439_v34, %v2477_v49  ;;  %v828_v19 = vmul.f32 %v2411_v12, %v191_v18  ;;  %v1033_v34 = vmul.f32 %v2449_v63, %v192_v31  ;;  %v194_v12 = vld [vmem:[%s2600_s2 + $0x28] sm:$0xff] }
0x12f6   :  { %v1442_v37 = vadd.f32 %v1441_v16, %v1434_v36  ;;  %v829_v33 = vsel %vm325_vm2, %v828_v19, 0.0  ;;  %v1034_v36 = vsel %vm325_vm2, %v1033_v34, 0.0  ;;  %v1238_v16 = vmul.f32 %v2474_v41, %v193_v40 }
0x12f8   :  { %v1556_v48 = vsel %vm325_vm2, %v1442_v37, -inf }
0x12f9   :  { %1557 = vmax.xlane.f32.xlu1 %v1556_v48  ;;  %v1239_v48 = vsel %vm325_vm2, %v1238_v16, 0.0 }
0x1382   :  { %v1558_v38 = vpop.xlane.xlu1 %1557 }
0x1383   :  { %v1559_v39 = vsub.f32 %v1442_v37, %v1558_v38 }
0x1385   :  { %v1560_v42 = vmul.f32 1.442695, %v1559_v39 }
0x1387   :  { %2092 = vpow2.f32 %v1560_v42 }
0x1394   :  { %v2093_v43 = vpop.eup %2092 }
0x1395   :  { %1997 = vmatmul.mubr.msk.f32.vlgmr.msra.gmra.mxu0 %vm325_vm2, %v2093_v43 }
0x1396   :  { %1708 = vmatpush1.msra.mxu0 %v2204_v21  ;;  %1747 = vmatprep.mubr.f32.mxu0 %v2114_v23 }
0x1397   :  { %1709 = vmatprep.subr.mxu0 %v2209_v22 }
0x1398   :  { %1710 = vmatpush1.msra.mxu0 %v2217_v24 }
0x1399   :  { %1711 = vmatprep.subr.mxu0 %v2223_v25 }
0x139a   :  { %1712 = vmatpush1.msra.mxu0 %v2229_v26 }
0x139b   :  { %1713 = vmatprep.subr.mxu0 %v2235_v27  ;;  %v1640_v27 = vsub.f32 1.0, %v187_v7 }
0x139c   :  { %1714 = vmatpush1.msra.mxu0 %v2241_v28 }
0x13a3   :  { %v1544_v47 = vpop.f32.mrf.mxu1 }
0x13a4   :  { %v1653_v45 = vadd.f32 %v1544_v47, %v178_v44 }
0x13a5   :  { %v1546_v53 = vpop.f32.mrf.mxu1 }
0x13a6   :  { %2094 = vtanh.f32 %v1653_v45  ;;  %v1913_v22 = vmul.f32 -1.442695, %v1653_v45  ;;  %v1549_v56 = vadd.f32 %v2323_v35, %v1546_v53 }
0x13a8   :  { %2096 = vpow2.f32 %v1913_v22 }
0x13b3   :  { %v2095_v21 = vpop.eup %2094 }
0x13b4   :  { %1663 = vrot.lane.b32.xlu0 %v2095_v21, %s2112_s4 }
0x13b5   :  { %v2097_v23 = vpop.eup %2096 }
0x13b6   :  { %v1657_v24 = vadd.f32 1.0, %v2097_v23 }
0x13b8   :  { %2098 = vrcp.f32 %v1657_v24 }
0x13c5   :  { %v2099_v25 = vpop.eup %2098 }
0x13c6   :  { %v1661_v20 = vmul.f32 %v2099_v25, %v2497_v0 }
0x1426   :  { %v1664_v26 = vpop.permute.xlu0 %1663 }
0x1427   :  { %v1666_v49 = vmul.f32 %v2099_v25, %v1664_v26  ;;  %v196_v26 = vld [vmem:[%s2600_s2 + $0x38] sm:$0xff] }
0x1429   :  { %1668 = vrot.lane.b32.xlu0 %v1666_v49, %s2113_s23 }
0x142d   :  { %1552 = vperm.xlu0 %2010, %v187_v7  }
0x1431   :  { %1643 = vperm.xlu0 %2010, %v1640_v27  }
0x1455   :  { %v1631_v28 = vpop.f32.mrf.mxu0 }
0x1456   :  { %v1632_v46 = vadd.f32 1e-30, %v1631_v28 }
0x1457   :  { %v1998_v8 = vpop.f32.mrf.mxu0 }
0x149b   :  { %v1669_v50 = vpop.permute.xlu0 %1668 }
0x149c   :  { %v1671_v51 = vadd.f32 %v1669_v50, %v1661_v20 }
0x149e   :  { %2100 = vtanh.f32 %v1671_v51 }
0x149f   :  { %2102 = vlog2.f32 %v1632_v46 }
0x14a8   :  { %v1553_v54 = vpop.permute.xlu0 %1552 }
0x14a9   :  { %v1555_v58 = vmul.f32 %v1553_v54, %v1549_v56 }
0x14ab   :  { %v2101_v5 = vpop.eup %2100  ;;  %v1648_v13 = vmul.f32 %v1555_v58, %v195_v10 }
0x14ac   :  { %1674 = vrot.lane.b32.xlu0 %v2101_v5, %s2112_s4  ;;  %v2103_v52 = vpop.eup %2102  ;;  %v1644_v61 = vpop.permute.xlu0 %1643 }
0x14ad   :  { %v1636_v57 = vmul.f32 0.6931472, %v2103_v52  ;;  %v1646_v62 = vmul.f32 %v1644_v61, %v1442_v37  ;;  %v1649_v55 = vsel %vm325_vm2, %v1648_v13, 0.0 }
0x14af   :  { %v1637_v59 = vadd.f32 %v1636_v57, %v1558_v38  ;;  %v1443_v38 = vmul.f32 %v2510_v32, %v194_v12 }
0x14b1   :  { %v1638_v60 = vadd.f32 %v1637_v59, %v1555_v58  ;;  %v1444_v42 = vsel %vm325_vm2, %v1443_v38, 0.0 }
0x14b3   :  { %v1639_v9 = vmul.f32 %v1638_v60, %v1553_v54 }
0x14b5   :  { %v2534_v2 = vadd.f32 %v1646_v62, %v1639_v9 }
0x14b7   :  { %v1760_v0 = vsel %vm325_vm2, %v2534_v2, -inf }
0x14cb   :  { %1761 = vmax.xlane.f32.xlu0 %v1760_v0 }
0x14e1   :  { %1847 = vperm.xlu0 %2010, %v1844_v1  }
0x1500   :  { %625 = vadd.xlane.f32.xlu0 %v624_v11 }
0x1504   :  { %1650 = vadd.xlane.f32.xlu0 %v1649_v55 }
0x151e   :  { %v1675_v14 = vpop.permute.xlu0 %1674 }
0x151f   :  { %v1677_v15 = vmul.f32 %v2099_v25, %v1675_v14 }
0x1521   :  { %1679 = vrot.lane.b32.xlu1 %v1677_v15, %s2113_s23 }
0x1525   :  { %1756 = vperm.xlu1 %2011, %v188_v3  }
0x1549   :  { %420 = vadd.xlane.f32.xlu1 %v419_v29 }
0x154d   :  { %830 = vadd.xlane.f32.xlu1 %v829_v33 }
0x1551   :  { %1035 = vadd.xlane.f32.xlu1 %v1034_v36 }
0x1554   :  { %v1762_v37 = vpop.xlane.xlu0 %1761 }
0x1555   :  { %v1763_v63 = vsub.f32 %v2534_v2, %v1762_v37  ;;  %1240 = vadd.xlane.f32.xlu1 %v1239_v48 }
0x1557   :  { %v1764_v39 = vmul.f32 1.442695, %v1763_v63 }
0x1559   :  { %2104 = vpow2.f32 %v1764_v39  ;;  %1445 = vadd.xlane.f32.xlu1 %v1444_v42 }
0x155c   :  { %v1848_v27 = vpop.permute.xlu0 %1847 }
0x155d   :  { %v1850_v20 = vmul.f32 %v1848_v27, %v2534_v2 }
0x1566   :  { %v2105_v43 = vpop.eup %2104 }
0x1567   :  { %2002 = vmatmul.mubr.msk.f32.vlgmr.msra.gmra.mxu1 %vm325_vm2, %v2105_v43 }
0x1593   :  { %v1680_v41 = vpop.permute.xlu1 %1679 }
0x1594   :  { %1914 = vmatmul.mubr.msk.f32.vlgmr.msra.gmra.mxu0 %vm51_vm0, %v1680_v41 }
0x15a0   :  { %v1757_v25 = vpop.permute.xlu1 %1756 }
0x15d2   :  { %v421_v59 = vpop.xlane.xlu1 %420 }
0x15d6   :  { %v831_v60 = vpop.xlane.xlu1 %830 }
0x15da   :  { %v1036_v61 = vpop.xlane.xlu1 %1035 }
0x15de   :  { %v1241_v9 = vpop.xlane.xlu1 %1240 }
0x15e2   :  { %v1446_v62 = vpop.xlane.xlu1 %1445 }
0x1627   :  { %v1835_v44 = vpop.f32.mrf.mxu1 }
0x1628   :  { %v1836_v45 = vadd.f32 1e-30, %v1835_v44 }
0x1629   :  { %v2003_v47 = vpop.f32.mrf.mxu1 }
0x162a   :  { %2106 = vlog2.f32 %v1836_v45 }
0x1637   :  { %v2107_v21 = vpop.eup %2106 }
0x1638   :  { %v1840_v22 = vmul.f32 0.6931472, %v2107_v21 }
0x163a   :  { %v1841_v7 = vadd.f32 %v1840_v22, %v1762_v37 }
0x1654   :  { %v1749_v32 = vpop.f32.mrf.mxu0 }
0x1656   :  { %v1750_v23 = vpop.f32.mrf.mxu0 }
0x1657   :  { %v1753_v24 = vadd.f32 %v2323_v35, %v1750_v23  ;;  %v626_v35 = vpop.xlane.xlu0 %625 }
0x1658   :  { %v627_v3 = vadd.f32 %v626_v35, %v421_v59 }
0x1659   :  { %v1759_v49 = vmul.f32 %v1757_v25, %v1753_v24 }
0x165a   :  { %v832_v1 = vadd.f32 %v831_v60, %v627_v3 }
0x165b   :  { %v1842_v28 = vadd.f32 %v1841_v7, %v1759_v49  ;;  %v1852_v8 = vmul.f32 %v1759_v49, %v196_v26  ;;  %v1651_v52 = vpop.xlane.xlu0 %1650 }
0x165c   :  { %v1037_v4 = vadd.f32 %v1036_v61, %v832_v1 }
0x165d   :  { %v1853_v50 = vsel %vm325_vm2, %v1852_v8, 0.0  ;;  %v1843_v51 = vmul.f32 %v1842_v28, %v1757_v25 }
0x165e   :  { %1854 = vadd.xlane.f32.xlu1 %v1853_v50  ;;  %v1242_v6 = vadd.f32 %v1241_v9, %v1037_v4 }
0x165f   :  { %v1851_v46 = vadd.f32 %v1850_v20, %v1843_v51 }
0x1660   :  { %v1447_v10 = vadd.f32 %v1446_v62, %v1242_v6 }
0x1661   :  { %v1857_v5 = vsel %vm325_vm2, %v1851_v46, -inf }
0x1662   :  { %1858 = vmax.xlane.f32.xlu0 %v1857_v5  ;;  %v1652_v13 = vadd.f32 %v1651_v52, %v1447_v10 }
0x16e7   :  { %v1855_v2 = vpop.xlane.xlu1 %1854 }
0x16e8   :  { %v1856_v14 = vadd.f32 %v1855_v2, %v1652_v13 }
0x16eb   :  { %v1859_v53 = vpop.xlane.xlu0 %1858 }
0x16ec   :  { %v1860_v54 = vsub.f32 %v1851_v46, %v1859_v53 }
0x16ee   :  { %v1861_v56 = vmul.f32 1.442695, %v1860_v54 }
0x16f0   :  { %2108 = vpow2.f32 %v1861_v56 }
0x16fd   :  { %v2109_v57 = vpop.eup %2108 }
0x16fe   :  { %v1863_v58 = vsel %vm325_vm2, %v2109_v57, 0.0 }
0x16ff   :  { %1864 = vadd.xlane.f32.xlu1 %v1863_v58 }
0x1788   :  { %v1865_v0 = vpop.xlane.xlu1 %1864 }
0x1789   :  { %2110 = vlog2.f32 %v1865_v0 }
0x1796   :  { %v2111_v11 = vpop.eup %2110 }
0x1797   :  { %v1867_v55 = vmul.f32 0.6931472, %v2111_v11 }
0x1799   :  { %v1868_v15 = vadd.f32 %v1867_v55, %v1859_v53 }
0x179b   :  { %v1869_v17 = vsub.f32 %v1868_v15, %v1856_v14 }
0x179d   :  { %v1871_v18 = vsub.f32 %v1869_v17, %v1870_v30 }
0x179f   :  { %1874 = vperm.xlu0 %2010, %v1871_v18  }
0x181a   :  { %v1875_v29 = vpop.permute.xlu0 %1874 }
0x181b   :  { %1877 = vst [vmem:[%s2602_s9] sm:$0xff] %v1875_v29 }

</bundles_post_ra>
